<compile_context>
chip_gen: v6e
topology: v6e:2x2x1
jax: 0.10.0
libtpu: 0.0.40
codegen_flags: <defaults>
</compile_context>

<pallas_src>
import functools

import jax
import jax.numpy as jnp
from jax.experimental import pallas as pl
from jax.experimental.pallas import tpu as pltpu

GN_EPS = 1e-5
NUM_GROUPS = 32


def _attn_kernel(x_ref, gmat_ref, gamma_ref, beta_ref,
                 wq_ref, bq_ref, wk_ref, bk_ref, wv_ref, bv_ref,
                 wp_ref, bp_ref,
                 o_ref, q_s, kT_s, vp_s, *, softmax_bf16):
    qi = pl.program_id(1)
    tq = o_ref.shape[0]

    # ---- once per batch element: GroupNorm + Q/K/(V@Wp) into VMEM scratch ----
    @pl.when(qi == 0)
    def _():
        x = x_ref[...].astype(jnp.float32)                          # (HW, C)
        # GroupNorm(32, C) stats via a group-aggregation matmul (f32).
        col_sum = jnp.sum(x, axis=0, keepdims=True)                 # (1, C)
        col_sq = jnp.sum(x * x, axis=0, keepdims=True)              # (1, C)
        gmat = gmat_ref[...]                                        # (C, C)
        mean = jnp.dot(col_sum, gmat, preferred_element_type=jnp.float32)
        mean_sq = jnp.dot(col_sq, gmat, preferred_element_type=jnp.float32)
        var = jnp.maximum(mean_sq - mean * mean, 0.0)               # clamp >= 0
        inv_std = jax.lax.rsqrt(var + GN_EPS)
        # fused affine: h = x*a + b
        a = inv_std * gamma_ref[...]                                # (1, C)
        b = beta_ref[...] - mean * a                                # (1, C)
        h = (x * a + b).astype(jnp.bfloat16)                        # (HW, C) bf16

        # Three separate projections (no (HW, 3C) f32 temporary); bf16 MXU
        # inputs, f32 accumulation, cast+store straight into scratch.
        q = jnp.dot(h, wq_ref[...], preferred_element_type=jnp.float32) + bq_ref[...]
        q_s[...] = q.astype(jnp.bfloat16)                           # (HW, C)

        k = jnp.dot(h, wk_ref[...], preferred_element_type=jnp.float32) + bk_ref[...]
        kT_s[...] = jnp.transpose(k).astype(jnp.bfloat16)           # (C, HW), once per batch

        v = jnp.dot(h, wv_ref[...], preferred_element_type=jnp.float32) + bv_ref[...]
        vp = jnp.dot(v.astype(jnp.bfloat16), wp_ref[...],
                     preferred_element_type=jnp.float32)            # (V @ Wp)
        vp_s[...] = vp.astype(jnp.bfloat16)                         # (HW, C)

    # ---- attention for this query tile against all (resident) keys ----
    q0 = pl.multiple_of(qi * tq, tq)
    q_tile = q_s[pl.ds(q0, tq), :]                                  # (tq, C) bf16

    # scores (scale already folded into Wq/bq); RHS is already (K, N).
    s = jnp.dot(q_tile, kT_s[...], preferred_element_type=jnp.float32)  # (tq, HW)
    m = jnp.max(s, axis=-1, keepdims=True)
    if softmax_bf16:
        # v6e / v7x: bf16-capable EUP -> bf16 exp, f32 sum accumulation.
        p = jnp.exp((s - m).astype(jnp.bfloat16))                   # (tq, HW) bf16
        denom = jnp.sum(p, axis=-1, keepdims=True, dtype=jnp.float32)
    else:
        # v5e and older: keep exp in f32 (no bf16 EUP/VPU).
        p_f32 = jnp.exp(s - m)
        denom = jnp.sum(p_f32, axis=-1, keepdims=True)
        p = p_f32.astype(jnp.bfloat16)

    h2 = jnp.dot(p, vp_s[...], preferred_element_type=jnp.float32)  # (tq, C) = P @ (V Wp)
    out = h2 * pl.reciprocal(denom, approx=True) + bp_ref[...]      # deferred softmax norm

    x_tile = x_ref[pl.ds(q0, tq), :].astype(jnp.float32)            # residual in f32
    o_ref[...] = (x_tile + out).astype(o_ref.dtype)


def _vmem_estimate(HW, C, tq):
    f32b, bf16b = 4, 2
    return (2 * HW * C * f32b            # x block (double-buffered)
            + 2 * tq * C * f32b          # out block
            + 2 * C * C * f32b           # gmat
            + 4 * C * f32b               # gamma, beta
            + 2 * 4 * C * C * bf16b      # wq/wk/wv/wp (double-buffered)
            + 2 * 4 * C * f32b           # bq/bk/bv/bp
            + 3 * HW * C * bf16b         # q / kT / (V@Wp) scratch
            + 3 * HW * C * f32b          # init temporaries (h, q/k/v partials)
            + 3 * tq * HW * f32b)        # score / exp tiles


def attn_block_pallas(x_nchw, params, *, q_tile=256):
    """x_nchw: (B, C, H, W) float32. params: dict of weights. Returns (B, C, H, W)."""
    B, C, H, W = x_nchw.shape
    assert C % NUM_GROUPS == 0
    HW = H * W
    x_tok = jnp.transpose(x_nchw, (0, 2, 3, 1)).reshape(B, HW, C)   # (B, HW, C)

    # chip detection: bf16 softmax only on v6/v7; tighter VMEM cap on v7x.
    kind = ""
    try:
        kind = jax.devices()[0].device_kind.lower()
    except Exception:
        pass
    softmax_bf16 = ("v6" in kind) or ("v7" in kind)
    vmem_cap = (56 << 20) if "v7" in kind else (100 << 20)

    # query tile size: multiple of 8 that divides HW (fallback: whole slab)
    tq = q_tile
    if HW % tq != 0 or tq % 8 != 0:
        tq = HW
    # enforce the VMEM budget by shrinking tq (not just clamping the limit)
    while (_vmem_estimate(HW, C, tq) > vmem_cap and tq % 2 == 0
           and (tq // 2) % 8 == 0 and HW % (tq // 2) == 0):
        tq //= 2
    n_qt = HW // tq

    gs = C // NUM_GROUPS
    # group-aggregation matrix: gmat[j, c] = 1/(gs*HW) if j, c in same group else 0
    gid = jnp.arange(C) // gs
    gmat = (gid[:, None] == gid[None, :]).astype(jnp.float32) / float(gs * HW)

    gamma = params["gn_gamma"].reshape(1, C).astype(jnp.float32)
    beta = params["gn_beta"].reshape(1, C).astype(jnp.float32)

    scale = float(C) ** (-0.5)
    # Conv2d weight (out, in, 1, 1) -> (in, out); softmax scale folded into Wq/bq.
    wq = (params["wq"].reshape(C, C).T * scale).astype(jnp.bfloat16)
    bq = (params["bq"] * scale).reshape(1, C).astype(jnp.float32)
    wk = params["wk"].reshape(C, C).T.astype(jnp.bfloat16)
    bk = params["bk"].reshape(1, C).astype(jnp.float32)
    wv = params["wv"].reshape(C, C).T.astype(jnp.bfloat16)
    bv = params["bv"].reshape(1, C).astype(jnp.float32)
    wp = params["wp"].reshape(C, C).T.astype(jnp.bfloat16)
    bp = params["bp"].reshape(1, C).astype(jnp.float32)

    est = _vmem_estimate(HW, C, tq)
    vmem_limit = int(min(max(est + est // 4 + (2 << 20), 16 << 20), vmem_cap))

    # TODO(synk): for very large C, pipeline_mode=pl.Buffered(1) on the constant
    # operands would halve their double-buffered footprint; negligible here.
    full = lambda shape: pl.BlockSpec(shape, lambda b, qi: (0,) * len(shape))
    kernel = functools.partial(_attn_kernel, softmax_bf16=softmax_bf16)

    out_tok = pl.pallas_call(
        kernel,
        out_shape=jax.ShapeDtypeStruct((B, HW, C), x_tok.dtype),
        grid=(B, n_qt),
        in_specs=[
            pl.BlockSpec((pl.Squeezed(), HW, C), lambda b, qi: (b, 0, 0)),  # x (resident per b)
            full((C, C)),                    # gmat (f32)
            full((1, C)), full((1, C)),      # gamma, beta
            full((C, C)), full((1, C)),      # wq (scale-folded), bq
            full((C, C)), full((1, C)),      # wk, bk
            full((C, C)), full((1, C)),      # wv, bv
            full((C, C)), full((1, C)),      # wp, bp
        ],
        out_specs=pl.BlockSpec((pl.Squeezed(), tq, C), lambda b, qi: (b, qi, 0)),
        scratch_shapes=[
            pltpu.VMEM((HW, C), jnp.bfloat16),   # q
            pltpu.VMEM((C, HW), jnp.bfloat16),   # k^T (stored transposed once per batch)
            pltpu.VMEM((HW, C), jnp.bfloat16),   # V @ Wp
        ],
        # qi axis MUST stay sequential ("arbitrary"): scratch filled at qi==0.
        compiler_params=pltpu.CompilerParams(
            dimension_semantics=("parallel", "arbitrary"),
            vmem_limit_bytes=vmem_limit),
    )(x_tok, gmat, gamma, beta, wq, bq, wk, bk, wv, bv, wp, bp)

    return jnp.transpose(out_tok.reshape(B, H, W, C), (0, 3, 1, 2))


def attn_block_ref(x_nchw, params):
    """Pure-JAX reference of the PyTorch forward (for verification)."""
    B, C, H, W = x_nchw.shape
    gs = C // NUM_GROUPS
    xg = x_nchw.reshape(B, NUM_GROUPS, gs, H, W)
    mean = jnp.mean(xg, axis=(2, 3, 4), keepdims=True)
    var = jnp.mean((xg - mean) ** 2, axis=(2, 3, 4), keepdims=True)
    hg = (xg - mean) / jnp.sqrt(var + GN_EPS)
    h = hg.reshape(B, C, H, W)
    h = h * params["gn_gamma"][None, :, None, None] + params["gn_beta"][None, :, None, None]

    def conv1x1(t, w, b):
        return jnp.einsum("bchw,oc->bohw", t, w.reshape(C, C)) + b[None, :, None, None]

    q = conv1x1(h, params["wq"], params["bq"])
    k = conv1x1(h, params["wk"], params["bk"])
    v = conv1x1(h, params["wv"], params["bv"])
    q = jnp.transpose(q, (0, 2, 3, 1)).reshape(B, H * W, C)
    k = k.reshape(B, C, H * W)
    w = jnp.einsum("bic,bcj->bij", q, k) * float(C) ** (-0.5)
    w = jax.nn.softmax(w, axis=-1)
    v = jnp.transpose(v, (0, 2, 3, 1)).reshape(B, H * W, C)
    hh = jnp.einsum("bij,bjc->bic", w, v)
    hh = jnp.transpose(hh.reshape(B, H, W, C), (0, 3, 1, 2))
    hh = conv1x1(hh, params["wp"], params["bp"])
    return x_nchw + hh


if __name__ == "__main__":
    # C multiple of 32 (GroupNorm) and of 128 (lane-dense stores); HW=256 with
    # q_tile=128 exercises both the qi==0 init path and a second query tile.
    B, C, H, W = 2, 128, 16, 16

    key = jax.random.PRNGKey(0)
    keys = jax.random.split(key, 10)
    params = {
        "gn_gamma": jax.random.normal(keys[9], (C,), jnp.float32) * 0.1 + 1.0,
        "gn_beta": jax.random.normal(keys[7], (C,), jnp.float32) * 0.1,
        "wq": jax.random.normal(keys[0], (C, C, 1, 1), jnp.float32) * 0.05,
        "bq": jax.random.normal(keys[1], (C,), jnp.float32) * 0.05,
        "wk": jax.random.normal(keys[2], (C, C, 1, 1), jnp.float32) * 0.05,
        "bk": jax.random.normal(keys[3], (C,), jnp.float32) * 0.05,
        "wv": jax.random.normal(keys[4], (C, C, 1, 1), jnp.float32) * 0.05,
        "bv": jax.random.normal(keys[5], (C,), jnp.float32) * 0.05,
        "wp": jax.random.normal(keys[6], (C, C, 1, 1), jnp.float32) * 0.05,
        "bp": jax.random.normal(keys[7], (C,), jnp.float32) * 0.05,
    }
    x = jax.random.normal(keys[8], (B, C, H, W), jnp.float32)

    out = jax.block_until_ready(attn_block_pallas(x, params, q_tile=128))
    ref = jax.block_until_ready(attn_block_ref(x, params))

    # bf16 MXU inputs (and bf16 exp on v6e/v7x) + approx reciprocal => looser tol
    err = float(jnp.max(jnp.abs(out - ref)))
    if err > 5e-2:
        raise AssertionError(f"Pallas kernel mismatch vs reference: max abs err {err}")
    print("KERNEL_OK")
</pallas_src>

<mosaic_0001>
module attributes {stable_mosaic.version = 11 : i64} {
  func.func @_attn_kernel(%arg0: i32, %arg1: i32, %arg2: memref<1x256x128xf32, #tpu.memory_space<vmem>>, %arg3: memref<128x128xf32, #tpu.memory_space<vmem>>, %arg4: memref<1x128xf32, #tpu.memory_space<vmem>>, %arg5: memref<1x128xf32, #tpu.memory_space<vmem>>, %arg6: memref<128x128xbf16, #tpu.memory_space<vmem>>, %arg7: memref<1x128xf32, #tpu.memory_space<vmem>>, %arg8: memref<128x128xbf16, #tpu.memory_space<vmem>>, %arg9: memref<1x128xf32, #tpu.memory_space<vmem>>, %arg10: memref<128x128xbf16, #tpu.memory_space<vmem>>, %arg11: memref<1x128xf32, #tpu.memory_space<vmem>>, %arg12: memref<128x128xbf16, #tpu.memory_space<vmem>>, %arg13: memref<1x128xf32, #tpu.memory_space<vmem>>, %arg14: memref<1x128x128xf32, #tpu.memory_space<vmem>>, %arg15: memref<256x128xbf16, #tpu.memory_space<vmem>>, %arg16: memref<128x256xbf16, #tpu.memory_space<vmem>>, %arg17: memref<256x128xbf16, #tpu.memory_space<vmem>>) attributes {dimension_semantics = [#tpu.dimension_semantics<parallel>, #tpu.dimension_semantics<arbitrary>], iteration_bounds = array<i64: 2, 2>, scalar_prefetch = 0 : i64, scratch_operands = 3 : i64, tpu.core_type = #tpu.core_type<tc>, window_params = [{transform_indices = @transform_0, window_bounds = array<i64: 1, 256, 128>}, {pipeline_mode = #tpu.pipeline_mode<synchronous>, transform_indices = @transform_1, window_bounds = array<i64: 128, 128>}, {pipeline_mode = #tpu.pipeline_mode<synchronous>, transform_indices = @transform_2, window_bounds = array<i64: 1, 128>}, {pipeline_mode = #tpu.pipeline_mode<synchronous>, transform_indices = @transform_3, window_bounds = array<i64: 1, 128>}, {pipeline_mode = #tpu.pipeline_mode<synchronous>, transform_indices = @transform_4, window_bounds = array<i64: 128, 128>}, {pipeline_mode = #tpu.pipeline_mode<synchronous>, transform_indices = @transform_5, window_bounds = array<i64: 1, 128>}, {pipeline_mode = #tpu.pipeline_mode<synchronous>, transform_indices = @transform_6, window_bounds = array<i64: 128, 128>}, {pipeline_mode = #tpu.pipeline_mode<synchronous>, transform_indices = @transform_7, window_bounds = array<i64: 1, 128>}, {pipeline_mode = #tpu.pipeline_mode<synchronous>, transform_indices = @transform_8, window_bounds = array<i64: 128, 128>}, {pipeline_mode = #tpu.pipeline_mode<synchronous>, transform_indices = @transform_9, window_bounds = array<i64: 1, 128>}, {pipeline_mode = #tpu.pipeline_mode<synchronous>, transform_indices = @transform_10, window_bounds = array<i64: 128, 128>}, {pipeline_mode = #tpu.pipeline_mode<synchronous>, transform_indices = @transform_11, window_bounds = array<i64: 1, 128>}, {transform_indices = @transform_12, window_bounds = array<i64: 1, 128, 128>}]} {
    %c0_i32 = arith.constant 0 : i32
    %0 = arith.cmpi eq, %arg1, %c0_i32 : i32
    %1 = arith.extui %0 : i1 to i32
    %c0_i32_0 = arith.constant 0 : i32
    %2 = arith.cmpi ne, %1, %c0_i32_0 : i32
    scf.if %2 {
      %c0_15 = arith.constant 0 : index
      %c0_16 = arith.constant 0 : index
      %c0_17 = arith.constant 0 : index
      %32 = vector.load %arg2[%c0_15, %c0_16, %c0_17] : memref<1x256x128xf32, #tpu.memory_space<vmem>>, vector<1x256x128xf32>
      %33 = vector.shape_cast %32 : vector<1x256x128xf32> to vector<256x128xf32>
      %cst_18 = arith.constant dense<0.000000e+00> : vector<128xf32>
      %34 = vector.multi_reduction <add>, %33, %cst_18 [0] : vector<256x128xf32> to vector<128xf32>
      %35 = vector.shape_cast %34 : vector<128xf32> to vector<1x128xf32>
      %36 = arith.mulf %33, %33 : vector<256x128xf32>
      %cst_19 = arith.constant dense<0.000000e+00> : vector<128xf32>
      %37 = vector.multi_reduction <add>, %36, %cst_19 [0] : vector<256x128xf32> to vector<128xf32>
      %38 = vector.shape_cast %37 : vector<128xf32> to vector<1x128xf32>
      %c0_20 = arith.constant 0 : index
      %c0_21 = arith.constant 0 : index
      %39 = vector.load %arg3[%c0_20, %c0_21] : memref<128x128xf32, #tpu.memory_space<vmem>>, vector<128x128xf32>
      %cst_22 = arith.constant dense<0.000000e+00> : vector<1x128xf32>
      %40 = tpu.matmul %35, %39, %cst_22 {dimension_numbers = #tpu.dot_dimension_numbers<[1], [0], [0], [1], [0, 0, 1, 1], [], []>} : vector<1x128xf32>, vector<128x128xf32>, vector<1x128xf32> -> vector<1x128xf32>
      %cst_23 = arith.constant dense<0.000000e+00> : vector<1x128xf32>
      %41 = tpu.matmul %38, %39, %cst_23 {dimension_numbers = #tpu.dot_dimension_numbers<[1], [0], [0], [1], [0, 0, 1, 1], [], []>} : vector<1x128xf32>, vector<128x128xf32>, vector<1x128xf32> -> vector<1x128xf32>
      %42 = arith.mulf %40, %40 : vector<1x128xf32>
      %43 = arith.subf %41, %42 : vector<1x128xf32>
      %cst_24 = arith.constant 0.000000e+00 : f32
      %44 = vector.broadcast %cst_24 : f32 to vector<1x128xf32>
      %45 = arith.maximumf %43, %44 : vector<1x128xf32>
      %cst_25 = arith.constant 9.99999974E-6 : f32
      %46 = vector.broadcast %cst_25 : f32 to vector<1x128xf32>
      %47 = arith.addf %45, %46 : vector<1x128xf32>
      %48 = math.rsqrt %47 : vector<1x128xf32>
      %c0_26 = arith.constant 0 : index
      %c0_27 = arith.constant 0 : index
      %49 = vector.load %arg4[%c0_26, %c0_27] : memref<1x128xf32, #tpu.memory_space<vmem>>, vector<1x128xf32>
      %50 = arith.mulf %48, %49 : vector<1x128xf32>
      %c0_28 = arith.constant 0 : index
      %c0_29 = arith.constant 0 : index
      %51 = vector.load %arg5[%c0_28, %c0_29] : memref<1x128xf32, #tpu.memory_space<vmem>>, vector<1x128xf32>
      %52 = arith.mulf %40, %50 : vector<1x128xf32>
      %53 = arith.subf %51, %52 : vector<1x128xf32>
      %54 = vector.broadcast %50 : vector<1x128xf32> to vector<256x128xf32>
      %55 = arith.mulf %33, %54 : vector<256x128xf32>
      %56 = vector.broadcast %53 : vector<1x128xf32> to vector<256x128xf32>
      %57 = arith.addf %55, %56 : vector<256x128xf32>
      %58 = arith.truncf %57 : vector<256x128xf32> to vector<256x128xbf16>
      %c0_30 = arith.constant 0 : index
      %c0_31 = arith.constant 0 : index
      %59 = vector.load %arg6[%c0_30, %c0_31] : memref<128x128xbf16, #tpu.memory_space<vmem>>, vector<128x128xbf16>
      %cst_32 = arith.constant dense<0.000000e+00> : vector<256x128xf32>
      %60 = tpu.matmul %58, %59, %cst_32 {dimension_numbers = #tpu.dot_dimension_numbers<[1], [0], [0], [1], [0, 0, 1, 1], [], []>} : vector<256x128xbf16>, vector<128x128xbf16>, vector<256x128xf32> -> vector<256x128xf32>
      %c0_33 = arith.constant 0 : index
      %c0_34 = arith.constant 0 : index
      %61 = vector.load %arg7[%c0_33, %c0_34] : memref<1x128xf32, #tpu.memory_space<vmem>>, vector<1x128xf32>
      %62 = vector.broadcast %61 : vector<1x128xf32> to vector<256x128xf32>
      %63 = arith.addf %60, %62 : vector<256x128xf32>
      %64 = arith.truncf %63 : vector<256x128xf32> to vector<256x128xbf16>
      %c0_35 = arith.constant 0 : index
      %c0_36 = arith.constant 0 : index
      %65 = vector.load %arg15[%c0_35, %c0_36] : memref<256x128xbf16, #tpu.memory_space<vmem>>, vector<256x128xbf16>
      tpu.vector_store %arg15[%c0_35, %c0_36], %64 {strides = array<i32>} : memref<256x128xbf16, #tpu.memory_space<vmem>>, vector<256x128xbf16>,
      %c0_37 = arith.constant 0 : index
      %c0_38 = arith.constant 0 : index
      %66 = vector.load %arg8[%c0_37, %c0_38] : memref<128x128xbf16, #tpu.memory_space<vmem>>, vector<128x128xbf16>
      %cst_39 = arith.constant dense<0.000000e+00> : vector<256x128xf32>
      %67 = tpu.matmul %58, %66, %cst_39 {dimension_numbers = #tpu.dot_dimension_numbers<[1], [0], [0], [1], [0, 0, 1, 1], [], []>} : vector<256x128xbf16>, vector<128x128xbf16>, vector<256x128xf32> -> vector<256x128xf32>
      %c0_40 = arith.constant 0 : index
      %c0_41 = arith.constant 0 : index
      %68 = vector.load %arg9[%c0_40, %c0_41] : memref<1x128xf32, #tpu.memory_space<vmem>>, vector<1x128xf32>
      %69 = vector.broadcast %68 : vector<1x128xf32> to vector<256x128xf32>
      %70 = arith.addf %67, %69 : vector<256x128xf32>
      %71 = tpu.transpose %70, [1, 0] : vector<256x128xf32> -> vector<128x256xf32>
      %72 = arith.truncf %71 : vector<128x256xf32> to vector<128x256xbf16>
      %c0_42 = arith.constant 0 : index
      %c0_43 = arith.constant 0 : index
      %73 = vector.load %arg16[%c0_42, %c0_43] : memref<128x256xbf16, #tpu.memory_space<vmem>>, vector<128x256xbf16>
      tpu.vector_store %arg16[%c0_42, %c0_43], %72 {strides = array<i32>} : memref<128x256xbf16, #tpu.memory_space<vmem>>, vector<128x256xbf16>,
      %c0_44 = arith.constant 0 : index
      %c0_45 = arith.constant 0 : index
      %74 = vector.load %arg10[%c0_44, %c0_45] : memref<128x128xbf16, #tpu.memory_space<vmem>>, vector<128x128xbf16>
      %cst_46 = arith.constant dense<0.000000e+00> : vector<256x128xf32>
      %75 = tpu.matmul %58, %74, %cst_46 {dimension_numbers = #tpu.dot_dimension_numbers<[1], [0], [0], [1], [0, 0, 1, 1], [], []>} : vector<256x128xbf16>, vector<128x128xbf16>, vector<256x128xf32> -> vector<256x128xf32>
      %c0_47 = arith.constant 0 : index
      %c0_48 = arith.constant 0 : index
      %76 = vector.load %arg11[%c0_47, %c0_48] : memref<1x128xf32, #tpu.memory_space<vmem>>, vector<1x128xf32>
      %77 = vector.broadcast %76 : vector<1x128xf32> to vector<256x128xf32>
      %78 = arith.addf %75, %77 : vector<256x128xf32>
      %79 = arith.truncf %78 : vector<256x128xf32> to vector<256x128xbf16>
      %c0_49 = arith.constant 0 : index
      %c0_50 = arith.constant 0 : index
      %80 = vector.load %arg12[%c0_49, %c0_50] : memref<128x128xbf16, #tpu.memory_space<vmem>>, vector<128x128xbf16>
      %cst_51 = arith.constant dense<0.000000e+00> : vector<256x128xf32>
      %81 = tpu.matmul %79, %80, %cst_51 {dimension_numbers = #tpu.dot_dimension_numbers<[1], [0], [0], [1], [0, 0, 1, 1], [], []>} : vector<256x128xbf16>, vector<128x128xbf16>, vector<256x128xf32> -> vector<256x128xf32>
      %82 = arith.truncf %81 : vector<256x128xf32> to vector<256x128xbf16>
      %c0_52 = arith.constant 0 : index
      %c0_53 = arith.constant 0 : index
      %83 = vector.load %arg17[%c0_52, %c0_53] : memref<256x128xbf16, #tpu.memory_space<vmem>>, vector<256x128xbf16>
      tpu.vector_store %arg17[%c0_52, %c0_53], %82 {strides = array<i32>} : memref<256x128xbf16, #tpu.memory_space<vmem>>, vector<256x128xbf16>,
    } else {
    }
    %c128_i32 = arith.constant 128 : i32
    %3 = arith.muli %arg1, %c128_i32 : i32
    %4 = tpu.assume_multiple %3, 128 : i32
    %5 = arith.index_cast %4 : i32 to index
    %c0 = arith.constant 0 : index
    %6 = vector.load %arg15[%5, %c0] : memref<256x128xbf16, #tpu.memory_space<vmem>>, vector<128x128xbf16>
    %c0_1 = arith.constant 0 : index
    %c0_2 = arith.constant 0 : index
    %7 = vector.load %arg16[%c0_1, %c0_2] : memref<128x256xbf16, #tpu.memory_space<vmem>>, vector<128x256xbf16>
    %cst = arith.constant dense<0.000000e+00> : vector<128x256xf32>
    %8 = tpu.matmul %6, %7, %cst {dimension_numbers = #tpu.dot_dimension_numbers<[1], [0], [0], [1], [0, 0, 1, 1], [], []>} : vector<128x128xbf16>, vector<128x256xbf16>, vector<128x256xf32> -> vector<128x256xf32>
    %cst_3 = arith.constant dense<0xFF800000> : vector<128xf32>
    %9 = vector.multi_reduction <maximumf>, %8, %cst_3 [1] : vector<128x256xf32> to vector<128xf32>
    %10 = vector.shape_cast %9 : vector<128xf32> to vector<128x1xf32>
    %11 = vector.broadcast %10 : vector<128x1xf32> to vector<128x256xf32>
    %12 = arith.subf %8, %11 : vector<128x256xf32>
    %13 = math.exp %12 : vector<128x256xf32>
    %cst_4 = arith.constant dense<0.000000e+00> : vector<128xf32>
    %14 = vector.multi_reduction <add>, %13, %cst_4 [1] : vector<128x256xf32> to vector<128xf32>
    %15 = vector.shape_cast %14 : vector<128xf32> to vector<128x1xf32>
    %16 = arith.truncf %13 : vector<128x256xf32> to vector<128x256xbf16>
    %c0_5 = arith.constant 0 : index
    %c0_6 = arith.constant 0 : index
    %17 = vector.load %arg17[%c0_5, %c0_6] : memref<256x128xbf16, #tpu.memory_space<vmem>>, vector<256x128xbf16>
    %cst_7 = arith.constant dense<0.000000e+00> : vector<128x128xf32>
    %18 = tpu.matmul %16, %17, %cst_7 {dimension_numbers = #tpu.dot_dimension_numbers<[1], [0], [0], [1], [0, 0, 1, 1], [], []>} : vector<128x256xbf16>, vector<256x128xbf16>, vector<128x128xf32> -> vector<128x128xf32>
    %19 = tpu.reciprocal %15 {approx = true} : vector<128x1xf32> -> vector<128x1xf32>
    %20 = vector.broadcast %19 : vector<128x1xf32> to vector<128x128xf32>
    %21 = arith.mulf %18, %20 : vector<128x128xf32>
    %c0_8 = arith.constant 0 : index
    %c0_9 = arith.constant 0 : index
    %22 = vector.load %arg13[%c0_8, %c0_9] : memref<1x128xf32, #tpu.memory_space<vmem>>, vector<1x128xf32>
    %23 = vector.broadcast %22 : vector<1x128xf32> to vector<128x128xf32>
    %24 = arith.addf %21, %23 : vector<128x128xf32>
    %c0_10 = arith.constant 0 : index
    %25 = arith.index_cast %4 : i32 to index
    %c0_11 = arith.constant 0 : index
    %26 = vector.load %arg2[%c0_10, %25, %c0_11] : memref<1x256x128xf32, #tpu.memory_space<vmem>>, vector<1x128x128xf32>
    %27 = vector.shape_cast %26 : vector<1x128x128xf32> to vector<128x128xf32>
    %28 = arith.addf %27, %24 : vector<128x128xf32>
    %c0_12 = arith.constant 0 : index
    %c0_13 = arith.constant 0 : index
    %c0_14 = arith.constant 0 : index
    %29 = vector.load %arg14[%c0_12, %c0_13, %c0_14] : memref<1x128x128xf32, #tpu.memory_space<vmem>>, vector<1x128x128xf32>
    %30 = vector.shape_cast %29 : vector<1x128x128xf32> to vector<128x128xf32>
    %31 = vector.shape_cast %28 : vector<128x128xf32> to vector<1x128x128xf32>
    tpu.vector_store %arg14[%c0_12, %c0_13, %c0_14], %31 {strides = array<i32>} : memref<1x128x128xf32, #tpu.memory_space<vmem>>, vector<1x128x128xf32>,
    return
  }
  func.func @transform_0(%arg0: i32, %arg1: i32) -> (i32, i32, i32) {
    %c0_i32 = arith.constant 0 : i32
    %c0_i32_0 = arith.constant 0 : i32
    %c0_i32_1 = arith.constant 0 : i32
    return %arg0, %c0_i32, %c0_i32_0 : i32, i32, i32
  }
  func.func @transform_1(%arg0: i32, %arg1: i32) -> (i32, i32) {
    %c0_i32 = arith.constant 0 : i32
    %c0_i32_0 = arith.constant 0 : i32
    %c0_i32_1 = arith.constant 0 : i32
    return %c0_i32, %c0_i32_0 : i32, i32
  }
  func.func @transform_2(%arg0: i32, %arg1: i32) -> (i32, i32) {
    %c0_i32 = arith.constant 0 : i32
    %c0_i32_0 = arith.constant 0 : i32
    %c0_i32_1 = arith.constant 0 : i32
    return %c0_i32, %c0_i32_0 : i32, i32
  }
  func.func @transform_3(%arg0: i32, %arg1: i32) -> (i32, i32) {
    %c0_i32 = arith.constant 0 : i32
    %c0_i32_0 = arith.constant 0 : i32
    %c0_i32_1 = arith.constant 0 : i32
    return %c0_i32, %c0_i32_0 : i32, i32
  }
  func.func @transform_4(%arg0: i32, %arg1: i32) -> (i32, i32) {
    %c0_i32 = arith.constant 0 : i32
    %c0_i32_0 = arith.constant 0 : i32
    %c0_i32_1 = arith.constant 0 : i32
    return %c0_i32, %c0_i32_0 : i32, i32
  }
  func.func @transform_5(%arg0: i32, %arg1: i32) -> (i32, i32) {
    %c0_i32 = arith.constant 0 : i32
    %c0_i32_0 = arith.constant 0 : i32
    %c0_i32_1 = arith.constant 0 : i32
    return %c0_i32, %c0_i32_0 : i32, i32
  }
  func.func @transform_6(%arg0: i32, %arg1: i32) -> (i32, i32) {
    %c0_i32 = arith.constant 0 : i32
    %c0_i32_0 = arith.constant 0 : i32
    %c0_i32_1 = arith.constant 0 : i32
    return %c0_i32, %c0_i32_0 : i32, i32
  }
  func.func @transform_7(%arg0: i32, %arg1: i32) -> (i32, i32) {
    %c0_i32 = arith.constant 0 : i32
    %c0_i32_0 = arith.constant 0 : i32
    %c0_i32_1 = arith.constant 0 : i32
    return %c0_i32, %c0_i32_0 : i32, i32
  }
  func.func @transform_8(%arg0: i32, %arg1: i32) -> (i32, i32) {
    %c0_i32 = arith.constant 0 : i32
    %c0_i32_0 = arith.constant 0 : i32
    %c0_i32_1 = arith.constant 0 : i32
    return %c0_i32, %c0_i32_0 : i32, i32
  }
  func.func @transform_9(%arg0: i32, %arg1: i32) -> (i32, i32) {
    %c0_i32 = arith.constant 0 : i32
    %c0_i32_0 = arith.constant 0 : i32
    %c0_i32_1 = arith.constant 0 : i32
    return %c0_i32, %c0_i32_0 : i32, i32
  }
  func.func @transform_10(%arg0: i32, %arg1: i32) -> (i32, i32) {
    %c0_i32 = arith.constant 0 : i32
    %c0_i32_0 = arith.constant 0 : i32
    %c0_i32_1 = arith.constant 0 : i32
    return %c0_i32, %c0_i32_0 : i32, i32
  }
  func.func @transform_11(%arg0: i32, %arg1: i32) -> (i32, i32) {
    %c0_i32 = arith.constant 0 : i32
    %c0_i32_0 = arith.constant 0 : i32
    %c0_i32_1 = arith.constant 0 : i32
    return %c0_i32, %c0_i32_0 : i32, i32
  }
  func.func @transform_12(%arg0: i32, %arg1: i32) -> (i32, i32, i32) {
    %c0_i32 = arith.constant 0 : i32
    %c0_i32_0 = arith.constant 0 : i32
    return %arg0, %arg1, %c0_i32 : i32, i32, i32
  }
}

</mosaic_0001>

<bundles_post_ra>
// kernel: tpu_custom_call.1
= control target key start
LH: loop header
LB: loop body
LE: loop exit
PB: predicated region body
PF: predicated region fallthrough
CT: control target
= control target key end

     0   :  { %s6086_s0 = inlined_call_operand.hbm [shape: f32[2,256,128], index: 0, kind: input, shape index: {}]   ;;  %s6087_s1 = inlined_call_operand.hbm [shape: f32[128,128], index: 1, kind: input, shape index: {}]   ;;  %s6088_s2 = inlined_call_operand.vmem [shape: f32[1,128], index: 2, kind: input, shape index: {}]   ;;  %s6089_s3 = inlined_call_operand.vmem [shape: f32[1,128], index: 3, kind: input, shape index: {}]   ;;  %s6090_s4 = inlined_call_operand.hbm [shape: bf16[128,128], index: 4, kind: input, shape index: {}]   ;;  %s6091_s5 = inlined_call_operand.vmem [shape: f32[1,128], index: 5, kind: input, shape index: {}]   ;;  %s6092_s6 = inlined_call_operand.hbm [shape: bf16[128,128], index: 6, kind: input, shape index: {}]   ;;  %s6093_s7 = inlined_call_operand.vmem [shape: f32[1,128], index: 7, kind: input, shape index: {}]   ;;  %s6094_s8 = inlined_call_operand.hbm [shape: bf16[128,128], index: 8, kind: input, shape index: {}]   ;;  %s6095_s9 = inlined_call_operand.vmem [shape: f32[1,128], index: 9, kind: input, shape index: {}]   ;;  %s6096_s10 = inlined_call_operand.hbm [shape: bf16[128,128], index: 10, kind: input, shape index: {}]   ;;  %s6097_s11 = inlined_call_operand.vmem [shape: f32[1,128], index: 11, kind: input, shape index: {}]   ;;  %s6098_s12 = inlined_call_operand.hbm [shape: f32[2,256,128], index: 12, kind: output, shape index: {}]  }
   0x1   :  { %6105 = sst [smem:[#allocation26_spill]] %s6087_s1 }
   0x2   :  { %6106 = sst [smem:[#allocation27_spill]] %s6089_s3 }
   0x3   :  { %6107 = sst [smem:[#allocation28_spill]] %s6090_s4 }
   0x4   :  { %6108 = sst [smem:[#allocation29_spill]] %s6091_s5 }
   0x5   :  { %6109 = sst [smem:[#allocation30_spill]] %s6092_s6 }
   0x6   :  { %6110 = sst [smem:[#allocation31_spill]] %s6093_s7 }
   0x7   :  { %6111 = sst [smem:[#allocation32_spill]] %s6094_s8 }
   0x8   :  { %6112 = sst [smem:[#allocation33_spill]] %s6095_s9 }
   0x9   :  { %6113 = sst [smem:[#allocation34_spill]] %s6096_s10 }
   0xa   :  { %6114 = sst [smem:[#allocation35_spill]] %s6097_s11 }
   0xb   :  { %6115 = sst [smem:[#allocation36_spill]] %s6098_s12 }
   0xc   :  { %17 = vsyncpa [#allocation6], 0 }
   0xd   :  { %19 = vsyncpa [#allocation6 + $0x1], 0 }
   0xe   :  { %20 = vsyncpa [#allocation9], 0 }
   0xf   :  { %21 = vsyncpa [#allocation12], 0 }
  0x10   :  { %22 = vsyncpa [#allocation15], 0 }
  0x11   :  { %23 = vsyncpa [#allocation7], 0 }
  0x12   :  { %25 = vsyncpa [#allocation7 + $0x1], 0  ;;  %s5050_s21 = smov 0   ;;  %s5052_s22 = smov 0  }
  0x13   :  { %s5054_s23 = smov 0   ;;  %s5056_s24 = smov 0  }
  0x14   :  { %s5058_s25 = smov 0   ;;  %s5060_s26 = smov 0  }
  0x15   :  { %s5062_s27 = smov 0   ;;  %s5064_s28 = smov 0  }
  0x16   :  { %s5066_s29 = smov 0   ;;  %s5068_s30 = smov 0  }
  0x17   :  { %s5070_s13 = smov 0  }
  0x18 LB: > { %6116 = sst [smem:[#allocation22_spill]] %s4955_s28  ;;  %s3322_s14 = sadd.s32 4294967295, %s4967_s13   ;;  %s4967_s13 = sphi %s5070_s13, %s31_s13   ;;  %s4963_s30 = sphi %s5068_s30, %s6146_s30   ;;  %s4959_s29 = sphi %s5066_s29, %s6154_s29   ;;  %s4955_s28 = sphi %s5064_s28, %s6144_s28   ;;  %s4951_s27 = sphi %s5062_s27, %s6153_s27   ;;  %s4947_s26 = sphi %s5060_s26, %s6152_s26   ;;  %s4943_s25 = sphi %s5058_s25, %s6151_s25   ;;  %s4939_s24 = sphi %s5056_s24, %s6150_s24   ;;  %s4935_s23 = sphi %s5054_s23, %s6149_s23   ;;  %s4931_s22 = sphi %s5052_s22, %s6148_s22   ;;  %s4927_s21 = sphi %s5050_s21, %s6147_s21  }
  0x19   : > { %6117 = sst [smem:[#allocation23_spill]] %s4963_s30  ;;  %p3324_p0 = scmp.ge.s32.totalorder %s4967_s13, 1 }
  0x1a   : > { %p5107_p1 = scmp.eq.s32.totalorder %s3322_s14, 0  ;;  %p5111_p2 = scmp.eq.s32.totalorder %s3322_s14, 3 }
  0x1b   : > { %p333_p3 = scmp.lt.s32.totalorder %s4967_s13, 5  ;;  %s4969_s18 = smov [#allocation8]  }
  0x1c   : > { %s345_s19 = sshll.u32 %s4969_s18, 4  ;;  %s4970_s14 = smov [#allocation11]   ;;  %s346_s19 = int_to_ptr.vmem [resolvable:$true] %s345_s19 }
  0x1d   : > { %p5116_p4 = pnand %p3324_p0, %p333_p3  ;;  %s380_s12 = sshll.u32 %s4970_s14, 4  ;;  %s381_s12 = int_to_ptr.vmem [resolvable:$true] %s380_s12 }
  0x1e   : > { %s4688_s11 = scalar_lea.vmem %s346_s19, 2048  ;;  %p4696_p11 = scmp.lt.s32.totalorder %s346_s19, %s346_s19 }
  0x1f   : > { %p4258_p5 = pneg %p5116_p4  ;;  %p4689_p8 = scmp.ne.s32.totalorder %s346_s19, %s4688_s11 }
  0x20   : > { %p4697_p12 = scmp.lt.s32.totalorder %s4688_s11, %s4688_s11 }
  0x21   : > { %p5124_p6 = pnand %p4258_p5, %p5107_p1 }
  0x22   : > { %p4698_p13 = por %p4697_p12, %p4696_p11 }
  0x23   : > { %p5130_p7 = pneg %p5124_p6 }
  0x25   : > { %p4691_p9 = pnand %p4689_p8, %p5130_p7 }
  0x27   : > { %p4692_p10 = pneg %p4691_p9 }
  0x29   : > { %p4699_p0 = pnand %p4698_p13, %p4692_p10 }
  0x2b   : > { %4702 = shalt.err (!%p4699_p0)
}
  0x2c   : > { %s6100_s18 = smov 128   ;;  %s6101_s14 = smov 8  }
  0x2d   : > { %s6123_s1 = sld [smem:[#allocation26_spill]]  ;;  %s4714_s5 = scalar_lea.vmem %s381_s12, 1024 }
  0x2e   : > { %p4715_p3 = scmp.ne.s32.totalorder %s381_s12, %s4714_s5  ;;  %p4722_p9 = scmp.lt.s32.totalorder %s381_s12, %s381_s12 }
  0x2f   : > { %p4723_p10 = scmp.lt.s32.totalorder %s4714_s5, %s4714_s5 }
  0x30   : > { %p4717_p5 = pnand %p4715_p3, %p5130_p7 }
  0x31   : > { %p4724_p11 = por %p4723_p10, %p4722_p9 }
  0x32   : > { %p4718_p8 = pneg %p4717_p5 }
  0x33   : > { %4261 = dma.hbm_to_vmem [thread:$0]  (!%p5124_p6), %s6123_s1, 2048, %s346_s19, [#allocation9], %s6100_s18, %s6100_s18, %s6101_s14  }
  0x34   : > { %p4725_p12 = pnand %p4724_p11, %p4718_p8 }
  0x36   : > { %4728 = shalt.err (!%p4725_p12)
}
  0x37   : > { %s4973_s11 = smov 64   ;;  %s4974_s3 = smov 4  }
  0x38   : > { %s6124_s6 = sld [smem:[#allocation30_spill]]  ;;  %s4975_s19 = smov [#allocation10]  }
  0x39   : > { %s364_s18 = sshll.u32 %s4975_s19, 4  ;;  %s4976_s14 = smov [#allocation13]   ;;  %s365_s18 = int_to_ptr.vmem [resolvable:$true] %s364_s18 }
  0x3a   : > { %s396_s5 = sshll.u32 %s4976_s14, 4  ;;  %s4740_s1 = scalar_lea.vmem %s365_s18, 1024  ;;  %s397_s5 = int_to_ptr.vmem [resolvable:$true] %s396_s5 }
  0x3b   : > { %p4741_p13 = scmp.ne.s32.totalorder %s365_s18, %s4740_s1  ;;  %p4748_p5 = scmp.lt.s32.totalorder %s365_s18, %s365_s18 }
  0x3c   : > { %p4749_p8 = scmp.lt.s32.totalorder %s4740_s1, %s4740_s1 }
  0x3d   : > { %p4743_p0 = pnand %p4741_p13, %p5130_p7 }
  0x3e   : > { %4267 = dma.hbm_to_vmem [thread:$0]  (!%p5124_p6), %s6124_s6, 1024, %s381_s12, [#allocation12], %s4973_s11, %s4973_s11, %s4974_s3  }
  0x3f   : > { %p4744_p3 = pneg %p4743_p0  ;;  %p4750_p9 = por %p4749_p8, %p4748_p5 }
  0x41   : > { %p4751_p10 = pnand %p4750_p9, %p4744_p3 }
  0x43   : > { %4754 = shalt.err (!%p4751_p10)
}
  0x44   : > { %s6125_s4 = sld [smem:[#allocation28_spill]]  ;;  %s4766_s14 = scalar_lea.vmem %s397_s5, 1024 }
  0x45   : > { %p4767_p11 = scmp.ne.s32.totalorder %s397_s5, %s4766_s14  ;;  %p4774_p0 = scmp.lt.s32.totalorder %s397_s5, %s397_s5 }
  0x46   : > { %p4775_p5 = scmp.lt.s32.totalorder %s4766_s14, %s4766_s14 }
  0x47   : > { %p4769_p12 = pnand %p4767_p11, %p5130_p7 }
  0x48   : > { %p4776_p3 = por %p4775_p5, %p4774_p0 }
  0x49   : > { %p4770_p13 = pneg %p4769_p12 }
  0x4a   : > { %4264 = dma.hbm_to_vmem [thread:$0]  (!%p5124_p6), %s6125_s4, 1024, %s365_s18, [#allocation9], %s4973_s11, %s4973_s11, %s4974_s3  }
  0x4b   : > { %p4777_p8 = pnand %p4776_p3, %p4770_p13 }
  0x4d   : > { %4780 = shalt.err (!%p4777_p8)
}
  0x4e   : > { %s6126_s8 = sld [smem:[#allocation32_spill]]  ;;  %s4977_s18 = smov [#allocation14]  }
  0x4f   : > { %s412_s19 = sshll.u32 %s4977_s18, 4  ;;  %s413_s19 = int_to_ptr.vmem [resolvable:$true] %s412_s19 }
  0x50   : > { %s4792_s12 = scalar_lea.vmem %s413_s19, 1024  ;;  %p4800_p12 = scmp.lt.s32.totalorder %s413_s19, %s413_s19 }
  0x51   : > { %p4793_p9 = scmp.ne.s32.totalorder %s413_s19, %s4792_s12  ;;  %p4801_p13 = scmp.lt.s32.totalorder %s4792_s12, %s4792_s12 }
  0x53   : > { %p4795_p10 = pnand %p4793_p9, %p5130_p7  ;;  %p4802_p0 = por %p4801_p13, %p4800_p12 }
  0x54   : > { %4270 = dma.hbm_to_vmem [thread:$0]  (!%p5124_p6), %s6126_s8, 1024, %s397_s5, [#allocation12], %s4973_s11, %s4973_s11, %s4974_s3  }
  0x55   : > { %p4796_p11 = pneg %p4795_p10 }
  0x57   : > { %p4803_p5 = pnand %p4802_p0, %p4796_p11 }
  0x59   : > { %4806 = shalt.err (!%p4803_p5)
}
  0x5a   : > { %s6127_s10 = sld [smem:[#allocation34_spill]]  ;;  %s3323_s28 = sadd.s32 4294967294, %s4967_s13  }
  0x5b   : > { %s40_s20 = sadd.s32 1, %s4959_s29  ;;  %s43_s14 = sadd.s32 1, %s4963_s30 }
  0x5c   : > { %p41_p7 = scmp.ge.s32.totalorder %s40_s20, 2  ;;  %s50_s1 = sadd.s32 1, %s4947_s26 }
  0x5d   : > { %p57_p3 = scmp.ne.s32.totalorder %s4947_s26, %s4943_s25  ;;  %p58_p8 = scmp.eq.s32.totalorder %s4967_s13, 0 }
  0x5e   : > { %s6156_s20 = smov (%p41_p7, %s40_s20), 0  ;;  %s6158_s14 = smov (!%p41_p7, %s43_s14), %s4963_s30 }
  0x5f   : > { %6128 = sst [smem:[#allocation24_spill]] %s6156_s20  ;;  %p45_p9 = scmp.ge.s32.totalorder %s6158_s14, 2 }
  0x60   : > { %4273 = dma.hbm_to_vmem [thread:$0]  (!%p5124_p6), %s6127_s10, 1024, %s413_s19, [#allocation15], %s4973_s11, %s4973_s11, %s4974_s3  }
  0x61   : > { %p63_p6 = scmp.ne.s32.totalorder %s4943_s25, %s4939_s24  ;;  %s305_s3 = ssub.s32 %s4959_s29, %s6156_s20 }
  0x62   : > { %p5198_p10 = por %p58_p8, %p57_p3  ;;  %s6160_s14 = smov (%p45_p9, %s6158_s14), 0 }
  0x63   : > { %p5204_p11 = por %p5107_p1, %p63_p6  ;;  %6131 = sst [smem:[#allocation25_spill]] %s6160_s14 }
  0x64   : > { %s309_s18 = sadd.s32 1, %s4935_s23  ;;  %p319_p12 = scmp.ne.s32.totalorder %s4935_s23, %s4931_s22 }
  0x65   : > { %s47_s24 = ssub.s32 %s4963_s30, %s6160_s14  ;;  %p325_p13 = scmp.ne.s32.totalorder %s4931_s22, %s4927_s21 }
  0x66   : > { %p48_p0 = scmp.eq.s32.totalorder %s47_s24, 0  ;;  %s306_s19 = sor.u32 %s305_s3, %s47_s24 }
  0x67   : > { %p307_p5 = scmp.eq.s32.totalorder %s306_s19, 0  ;;  %p5219_p7 = por %p5111_p2, %p319_p12 }
  0x68   : > { %s5224_s7 = scalar_select %p48_p0, %s4947_s26, %s50_s1  }
  0x69   : > { %s5227_s5 = scalar_select %p307_p5, %s4935_s23, %s309_s18  }
  0x6a   : > { %p326_p3 = scmp.eq.s32.totalorder %s3323_s28, 3  ;;  %p4287_p8 = scmp.lt.s32.totalorder %s4967_s13, 4 }
  0x6b   : > { %s429_s4 = sand.u32 1, %s4947_s26   ;;  %s3507_s6 = sshll.u32 %s4963_s30, 12 }
  0x6c   : > { %p5232_p6 = por %p326_p3, %p325_p13  ;;  %s3331_s10 = sshll.u32 %s429_s4, 8 }
  0x6d   : > { %s439_s16 = scalar_lea.hbm %s6086_s0, %s3507_s6  ;;  %p5241_p2 = pnand %p4287_p8, %p5198_p10 }
  0x6e   : > { %s433_s1 = scalar_lea.vmem [#allocation5], %s3331_s10  ;;  %s430_s18 = scalar_lea.sflag [#allocation6], %s429_s4 }
  0x6f   : > { %s440_s28 = sshll.u32 %s433_s1, 4  ;;  %p4809_p9 = pneg %p5241_p2  ;;  %s441_s28 = int_to_ptr.vmem [resolvable:$true] %s440_s28 }
  0x70   : > { %s4820_s14 = scalar_lea.vmem %s441_s28, 4096  ;;  %s4978_s20 = smov [#allocation5]  }
  0x71   : > { %p4821_p12 = scmp.ne.s32.totalorder %s441_s28, %s4820_s14  ;;  %s4825_s30 = sshll.u32 %s4978_s20, 4  ;;  %s4826_s30 = int_to_ptr.vmem [resolvable:$false] %s4825_s30 }
  0x72   : > { %s4827_s6 = scalar_lea.vmem %s4826_s30, 8192  ;;  %p4828_p5 = scmp.lt.s32.totalorder %s441_s28, %s4826_s30 }
  0x73   : > { %p4823_p13 = pnand %p4821_p12, %p4809_p9  ;;  %p4829_p10 = scmp.lt.s32.totalorder %s4827_s6, %s4820_s14 }
  0x75   : > { %p4824_p0 = pneg %p4823_p13  ;;  %p4830_p3 = por %p4829_p10, %p4828_p5 }
  0x77   : > { %p4831_p8 = pnand %p4830_p3, %p4824_p0 }
  0x79   : > { %4834 = shalt.err (!%p4831_p8)
}
  0x7a   : > { %s6135_s10 = smov 8   ;;  %s6136_s11 = smov 128  }
  0x7b   : > { %4277 = dma.hbm_to_vmem [thread:$0]  (!%p5241_p2), %s439_s16, 4096, %s441_s28, %s430_s18, %s6136_s11, %s6136_s11, %s6135_s10  }
  0x7c   : > { %452 = sbr.rel (%p5116_p4) target bundleno = 1655 (0x677), region = 68  ;;  %s454_s4 = sand.u32 (!%p5116_p4), 1, %s4943_s25  }
  0x7d   : > { %s3335_s20 = sshll.u32 (!%p5116_p4), %s454_s4, 8  ;;  %s455_s3 = scalar_lea.sflag (!%p5116_p4), [#allocation6], %s454_s4 }
  0x7e   : > { %s5255_s24 = scalar_lea.vmem (!%p5116_p4), [#allocation5], %s3335_s20 }
  0x81   : > { %4906 = dma.done.wait (%p5204_p11), %s455_s3, 4096  }
  0x82   : > { %4908 = vsyncadd (%p5204_p11), %s455_s3, 4294963200 }
  0x83   : > { %4910 = dma.done.wait (%p5107_p1), [#allocation9], 3072  }
  0x84   : > { %4912 = vsyncadd (%p5107_p1), [#allocation9], 4294964224 }
  0x85   : > { %4914 = dma.done.wait (%p5107_p1), [#allocation12], 2048  }
  0x86   : > { %4916 = vsyncadd (%p5107_p1), [#allocation12], 4294965248 }
  0x87   : > { %4918 = dma.done.wait (%p5107_p1), [#allocation15], 1024  }
  0x88   : > { %4920 = vsyncadd (%p5107_p1), [#allocation15], 4294966272  ;;  %s516_s30 = sand.u32 1, %s4931_s22   ;;  %p3342_p4 = scmp.ne.s32.totalorder %s4951_s27, 0 }
  0x89   : > { %s3341_s17 = sshll.u32 %s516_s30, 7  ;;  %s6137_s1 = sld [smem:[#allocation27_spill]] (!%p3342_p4) }
  0x8a   : > { %s5276_s14 = scalar_lea.vmem [#allocation16], %s3341_s17  ;;  %524 = sbr.rel (%p3342_p4) target bundleno = 984 (0x3d8), region = 96 }
  0x8b   : > { %s6138_s6 = sld [smem:[#allocation29_spill]] (!%p3342_p4) }
  0x8c   : > { %s6139_s4 = sld [smem:[#allocation31_spill]] (!%p3342_p4) }
  0x8d   : > { %s6140_s17 = sld [smem:[#allocation33_spill]] (!%p3342_p4) }
  0x8f   : > { %v678_v0 = vld [vmem:[#allocation8 + $0x78] sm:$0xff]  ;;  %v4979_v1 = vmov 0.0   ;;  %v677_v2 = vld [vmem:[#allocation8 + $0x70] sm:$0xff]  ;;  %v676_v3 = vld [vmem:[#allocation8 + $0x68] sm:$0xff]  ;;  %vm4980_vm0 = vmmov 0  }
  0x90   : > { %3972 = vmatprep.subr.mxu0 %v4979_v1  ;;  %4007 = vmatprep.subr.mxu1 %v4979_v1  ;;  %v675_v4 = vld [vmem:[#allocation8 + $0x60] sm:$0xff]  ;;  %v5289_v6 = vld [vmem:[%s5255_s24 + $0x8] sm:$0xff]  ;;  %v5292_v7 = vld [vmem:[%s5255_s24 + $0x10] sm:$0xff] }
  0x91   : > { %3973 = vmatpush3.msra.mxu0 %v678_v0  ;;  %4008 = vmatpush3.msra.mxu1 %v678_v0  ;;  %v5286_v5 = vld [vmem:[%s5255_s24] sm:$0xff]  ;;  %v674_v9 = vld [vmem:[#allocation8 + $0x58] sm:$0xff]  ;;  %v673_v12 = vld [vmem:[#allocation8 + $0x50] sm:$0xff]  ;;  %v595_v26 = vmul.f32 %v5289_v6, %v5289_v6  ;;  %v596_v30 = vmul.f32 %v5292_v7, %v5292_v7 }
  0x92   : > { %3974 = vmatprep.subr.mxu0 %v4979_v1  ;;  %4009 = vmatprep.subr.mxu1 %v4979_v1  ;;  %v557_v8 = vadd.f32 %v5289_v6, %v5286_v5  ;;  %v5299_v10 = vld [vmem:[%s5255_s24 + $0x18] sm:$0xff]  ;;  %v5305_v13 = vld [vmem:[%s5255_s24 + $0x20] sm:$0xff]  ;;  %v672_v15 = vld [vmem:[#allocation8 + $0x48] sm:$0xff]  ;;  %v594_v25 = vmul.f32 %v5286_v5, %v5286_v5 }
  0x93   : > { %3975 = vmatpush3.msra.mxu0 %v677_v2  ;;  %4010 = vmatpush3.msra.mxu1 %v677_v2  ;;  %v5311_v16 = vld [vmem:[%s5255_s24 + $0x28] sm:$0xff]  ;;  %v671_v18 = vld [vmem:[#allocation8 + $0x40] sm:$0xff]  ;;  %v5317_v19 = vld [vmem:[%s5255_s24 + $0x30] sm:$0xff]  ;;  %v597_v34 = vmul.f32 %v5299_v10, %v5299_v10  ;;  %v598_v39 = vmul.f32 %v5305_v13, %v5305_v13 }
  0x94   : > { %3976 = vmatprep.subr.mxu0 %v4979_v1  ;;  %4011 = vmatprep.subr.mxu1 %v4979_v1  ;;  %v558_v11 = vadd.f32 %v557_v8, %v5292_v7  ;;  %v670_v20 = vld [vmem:[#allocation8 + $0x38] sm:$0xff]  ;;  %v669_v22 = vld [vmem:[#allocation8 + $0x30] sm:$0xff]  ;;  %v5326_v24 = vld [vmem:[%s5255_s24 + $0x40] sm:$0xff]  ;;  %v626_v35 = vadd.f32 %v595_v26, %v594_v25  ;;  %v599_v44 = vmul.f32 %v5311_v16, %v5311_v16 }
  0x95   : > { %3977 = vmatpush3.msra.mxu0 %v676_v3  ;;  %4012 = vmatpush3.msra.mxu1 %v676_v3  ;;  %v5323_v23 = vld [vmem:[%s5255_s24 + $0x38] sm:$0xff]  ;;  %v668_v28 = vld [vmem:[#allocation8 + $0x28] sm:$0xff]  ;;  %v667_v32 = vld [vmem:[#allocation8 + $0x20] sm:$0xff]  ;;  %v600_v49 = vmul.f32 %v5317_v19, %v5317_v19  ;;  %v602_v58 = vmul.f32 %v5326_v24, %v5326_v24 }
  0x96   : > { %3978 = vmatprep.subr.mxu0 %v4979_v1  ;;  %4013 = vmatprep.subr.mxu1 %v4979_v1  ;;  %v559_v14 = vadd.f32 %v558_v11, %v5299_v10  ;;  %v5336_v29 = vld [vmem:[%s5255_s24 + $0x48] sm:$0xff]  ;;  %v5344_v33 = vld [vmem:[%s5255_s24 + $0x50] sm:$0xff]  ;;  %v666_v37 = vld [vmem:[#allocation8 + $0x18] sm:$0xff]  ;;  %v627_v40 = vadd.f32 %v626_v35, %v596_v30  ;;  %v601_v54 = vmul.f32 %v5323_v23, %v5323_v23 }
  0x97   : > { %3979 = vmatpush3.msra.mxu0 %v675_v4  ;;  %4014 = vmatpush3.msra.mxu1 %v675_v4  ;;  %v5352_v38 = vld [vmem:[%s5255_s24 + $0x58] sm:$0xff]  ;;  %v665_v42 = vld [vmem:[#allocation8 + $0x10] sm:$0xff]  ;;  %v5360_v43 = vld [vmem:[%s5255_s24 + $0x60] sm:$0xff]  ;;  %v603_v62 = vmul.f32 %v5336_v29, %v5336_v29  ;;  %v604_v3 = vmul.f32 %v5344_v33, %v5344_v33 }
  0x98   : > { %3980 = vmatprep.subr.mxu0 %v4979_v1  ;;  %4015 = vmatprep.subr.mxu1 %v4979_v1  ;;  %v560_v17 = vadd.f32 %v559_v14, %v5305_v13  ;;  %v628_v45 = vadd.f32 %v627_v40, %v597_v34  ;;  %v664_v47 = vld [vmem:[#allocation8 + $0x8] sm:$0xff]  ;;  %v663_v52 = vld [vmem:[#allocation8] sm:$0xff]  ;;  %v5376_v53 = vld [vmem:[%s5255_s24 + $0x70] sm:$0xff] }
  0x99   : > { %3981 = vmatpush3.msra.mxu0 %v674_v9  ;;  %4016 = vmatpush3.msra.mxu1 %v674_v9  ;;  %v5368_v48 = vld [vmem:[%s5255_s24 + $0x68] sm:$0xff]  ;;  %v5384_v57 = vld [vmem:[%s5255_s24 + $0x78] sm:$0xff]  ;;  %v5392_v61 = vld [vmem:[%s5255_s24 + $0x80] sm:$0xff]  ;;  %v605_v9 = vmul.f32 %v5352_v38, %v5352_v38  ;;  %v608_v26 = vmul.f32 %v5376_v53, %v5376_v53 }
  0x9a   : > { %3982 = vmatprep.subr.mxu0 %v4979_v1  ;;  %4017 = vmatprep.subr.mxu1 %v4979_v1  ;;  %v561_v21 = vadd.f32 %v560_v17, %v5311_v16  ;;  %v629_v50 = vadd.f32 %v628_v45, %v598_v39  ;;  %v5399_v2 = vld [vmem:[%s5255_s24 + $0x88] sm:$0xff]  ;;  %v5409_v14 = vld [vmem:[%s5255_s24 + $0x90] sm:$0xff]  ;;  %v5421_v25 = vld [vmem:[%s5255_s24 + $0xa0] sm:$0xff] }
  0x9b   : > { %3983 = vmatpush3.msra.mxu0 %v673_v12  ;;  %4018 = vmatpush3.msra.mxu1 %v673_v12  ;;  %v5427_v30 = vld [vmem:[%s5255_s24 + $0xa8] sm:$0xff]  ;;  %v5433_v35 = vld [vmem:[%s5255_s24 + $0xb0] sm:$0xff]  ;;  %v5439_v40 = vld [vmem:[%s5255_s24 + $0xb8] sm:$0xff] }
  0x9c   : > { %3984 = vmatprep.subr.mxu0 %v4979_v1  ;;  %4019 = vmatprep.subr.mxu1 %v4979_v1  ;;  %v562_v27 = vadd.f32 %v561_v21, %v5317_v19  ;;  %v630_v55 = vadd.f32 %v629_v50, %v599_v44  ;;  %v5445_v45 = vld [vmem:[%s5255_s24 + $0xc0] sm:$0xff]  ;;  %v5451_v50 = vld [vmem:[%s5255_s24 + $0xc8] sm:$0xff] }
  0x9d   : > { %3985 = vmatpush3.msra.mxu0 %v672_v15  ;;  %4020 = vmatpush3.msra.mxu1 %v672_v15  ;;  %v606_v15 = vmul.f32 %v5360_v43, %v5360_v43 }
  0x9e   : > { %3986 = vmatprep.subr.mxu0 %v4979_v1  ;;  %4021 = vmatprep.subr.mxu1 %v4979_v1  ;;  %v563_v31 = vadd.f32 %v562_v27, %v5323_v23  ;;  %v631_v59 = vadd.f32 %v630_v55, %v600_v49  ;;  %v5457_v55 = vld [vmem:[%s5255_s24 + $0xd0] sm:$0xff] }
  0x9f   : > { %3987 = vmatpush3.msra.mxu0 %v671_v18  ;;  %4022 = vmatpush3.msra.mxu1 %v671_v18  ;;  %v5415_v18 = vld [vmem:[%s5255_s24 + $0x98] sm:$0xff] }
  0xa0   : > { %3988 = vmatprep.subr.mxu0 %v4979_v1  ;;  %4023 = vmatprep.subr.mxu1 %v4979_v1  ;;  %v564_v36 = vadd.f32 %v563_v31, %v5326_v24  ;;  %v632_v63 = vadd.f32 %v631_v59, %v601_v54  ;;  %v609_v31 = vmul.f32 %v5384_v57, %v5384_v57 }
  0xa1   : > { %3989 = vmatpush3.msra.mxu0 %v670_v20  ;;  %4024 = vmatpush3.msra.mxu1 %v670_v20  ;;  %v607_v20 = vmul.f32 %v5368_v48, %v5368_v48 }
  0xa2   : > { %3990 = vmatprep.subr.mxu0 %v4979_v1  ;;  %4025 = vmatprep.subr.mxu1 %v4979_v1  ;;  %v565_v41 = vadd.f32 %v564_v36, %v5336_v29  ;;  %v633_v4 = vadd.f32 %v632_v63, %v602_v58  ;;  %v610_v36 = vmul.f32 %v5392_v61, %v5392_v61 }
  0xa3   : > { %3991 = vmatpush3.msra.mxu0 %v669_v22  ;;  %4026 = vmatpush3.msra.mxu1 %v669_v22 }
  0xa4   : > { %3992 = vmatprep.subr.mxu0 %v4979_v1  ;;  %4027 = vmatprep.subr.mxu1 %v4979_v1  ;;  %v566_v46 = vadd.f32 %v565_v41, %v5344_v33  ;;  %v634_v11 = vadd.f32 %v633_v4, %v603_v62  ;;  %v611_v41 = vmul.f32 %v5399_v2, %v5399_v2 }
  0xa5   : > { %3993 = vmatpush3.msra.mxu0 %v668_v28  ;;  %4028 = vmatpush3.msra.mxu1 %v668_v28  ;;  %v615_v62 = vmul.f32 %v5427_v30, %v5427_v30  ;;  %v616_v4 = vmul.f32 %v5433_v35, %v5433_v35 }
  0xa6   : > { %3994 = vmatprep.subr.mxu0 %v4979_v1  ;;  %4029 = vmatprep.subr.mxu1 %v4979_v1  ;;  %v567_v51 = vadd.f32 %v566_v46, %v5352_v38  ;;  %v612_v46 = vmul.f32 %v5409_v14, %v5409_v14 }
  0xa7   : > { %3995 = vmatpush3.msra.mxu0 %v667_v32  ;;  %4030 = vmatpush3.msra.mxu1 %v667_v32 }
  0xa8   : > { %3996 = vmatprep.subr.mxu0 %v4979_v1  ;;  %4031 = vmatprep.subr.mxu1 %v4979_v1  ;;  %v568_v56 = vadd.f32 %v567_v51, %v5360_v43  ;;  %v613_v51 = vmul.f32 %v5415_v18, %v5415_v18 }
  0xa9   : > { %3997 = vmatpush3.msra.mxu0 %v666_v37  ;;  %4032 = vmatpush3.msra.mxu1 %v666_v37 }
  0xaa   : > { %3998 = vmatprep.subr.mxu0 %v4979_v1  ;;  %4033 = vmatprep.subr.mxu1 %v4979_v1  ;;  %v569_v60 = vadd.f32 %v568_v56, %v5368_v48  ;;  %v614_v56 = vmul.f32 %v5421_v25, %v5421_v25 }
  0xab   : > { %3999 = vmatpush3.msra.mxu0 %v665_v42  ;;  %4034 = vmatpush3.msra.mxu1 %v665_v42 }
  0xac   : > { %4000 = vmatprep.subr.mxu0 %v4979_v1  ;;  %4035 = vmatprep.subr.mxu1 %v4979_v1  ;;  %v570_v0 = vadd.f32 %v569_v60, %v5376_v53  ;;  %v5463_v60 = vld [vmem:[%s5255_s24 + $0xd8] sm:$0xff] }
  0xad   : > { %4001 = vmatpush3.msra.mxu0 %v664_v47  ;;  %4004 = vmatprep.mubr.msk.f32.mxu0 %vm4980_vm0, %v4979_v1 }
  0xae   : > { %4002 = vmatprep.subr.mxu0 %v4979_v1  ;;  %4036 = vmatpush3.msra.mxu1 %v664_v47  ;;  %v571_v8 = vadd.f32 %v570_v0, %v5384_v57 }
  0xaf   : > { %4003 = vmatpush3.msra.mxu0 %v663_v52  ;;  %4037 = vmatprep.subr.mxu1 %v4979_v1 }
  0xb0   : > { %4038 = vmatpush3.msra.mxu1 %v663_v52  ;;  %4039 = vmatprep.mubr.msk.f32.mxu1 %vm4980_vm0, %v4979_v1  ;;  %v572_v12 = vadd.f32 %v571_v8, %v5392_v61  ;;  %v635_v1 = vadd.f32 %v634_v11, %v604_v3  ;;  %v5469_v3 = vld [vmem:[%s5255_s24 + $0xe0] sm:$0xff]  ;;  %v5475_v11 = vld [vmem:[%s5255_s24 + $0xe8] sm:$0xff] }
  0xb2   : > { %v573_v17 = vadd.f32 %v572_v12, %v5399_v2  ;;  %v636_v21 = vadd.f32 %v635_v1, %v605_v9  ;;  %v617_v12 = vmul.f32 %v5439_v40, %v5439_v40 }
  0xb4   : > { %v574_v22 = vadd.f32 %v573_v17, %v5409_v14  ;;  %v637_v27 = vadd.f32 %v636_v21, %v606_v15  ;;  %v5481_v17 = vld [vmem:[%s5255_s24 + $0xf0] sm:$0xff] }
  0xb6   : > { %v575_v28 = vadd.f32 %v574_v22, %v5415_v18  ;;  %v638_v32 = vadd.f32 %v637_v27, %v607_v20  ;;  %v618_v20 = vmul.f32 %v5445_v45, %v5445_v45  ;;  %v619_v27 = vmul.f32 %v5451_v50, %v5451_v50 }
  0xb8   : > { %v576_v34 = vadd.f32 %v575_v28, %v5421_v25  ;;  %v639_v37 = vadd.f32 %v638_v32, %v608_v26  ;;  %v5487_v26 = vld [vmem:[%s5255_s24 + $0xf8] sm:$0xff]  ;;  %v620_v32 = vmul.f32 %v5457_v55, %v5457_v55 }
  0xba   : > { %v577_v39 = vadd.f32 %v576_v34, %v5427_v30  ;;  %v640_v42 = vadd.f32 %v639_v37, %v609_v31  ;;  %v621_v37 = vmul.f32 %v5463_v60, %v5463_v60 }
  0xbc   : > { %v578_v44 = vadd.f32 %v577_v39, %v5433_v35  ;;  %v641_v47 = vadd.f32 %v640_v42, %v610_v36  ;;  %v622_v42 = vmul.f32 %v5469_v3, %v5469_v3 }
  0xbe   : > { %v579_v49 = vadd.f32 %v578_v44, %v5439_v40  ;;  %v642_v52 = vadd.f32 %v641_v47, %v611_v41  ;;  %v623_v47 = vmul.f32 %v5475_v11, %v5475_v11 }
  0xc0   : > { %v580_v54 = vadd.f32 %v579_v49, %v5445_v45  ;;  %v643_v58 = vadd.f32 %v642_v52, %v612_v46  ;;  %v624_v52 = vmul.f32 %v5481_v17, %v5481_v17 }
  0xc2   : > { %v581_v59 = vadd.f32 %v580_v54, %v5451_v50  ;;  %v644_v63 = vadd.f32 %v643_v58, %v613_v51  ;;  %v625_v58 = vmul.f32 %v5487_v26, %v5487_v26 }
  0xc4   : > { %v582_v0 = vadd.f32 %v581_v59, %v5457_v55  ;;  %v645_v8 = vadd.f32 %v644_v63, %v614_v56 }
  0xc6   : > { %v583_v9 = vadd.f32 %v582_v0, %v5463_v60  ;;  %v646_v15 = vadd.f32 %v645_v8, %v615_v62 }
  0xc8   : > { %v584_v1 = vadd.f32 %v583_v9, %v5469_v3  ;;  %v647_v21 = vadd.f32 %v646_v15, %v616_v4 }
  0xca   : > { %v585_v22 = vadd.f32 %v584_v1, %v5475_v11  ;;  %v648_v28 = vadd.f32 %v647_v21, %v617_v12  ;;  %v4508_v21 = vld [vmem:[#allocation10 + $0x38] sm:$0xff]  }
  0xcb   : > { %4042 = vmatprep.subr.bf16.mxu0 %v4508_v21 }
  0xcc   : > { %v586_v31 = vadd.f32 %v585_v22, %v5481_v17  ;;  %v649_v34 = vadd.f32 %v648_v28, %v618_v20  ;;  %v4509_v22 = vld [vmem:[#allocation11 + $0x38] sm:$0xff]   ;;  %v4511_v28 = vld [vmem:[#allocation11 + $0x30] sm:$0xff]  }
  0xcd   : > { %4090 = vmatprep.subr.bf16.mxu1 %v4509_v22 }
  0xce   : > { %v587_v36 = vadd.f32 %v586_v31, %v5487_v26  ;;  %v650_v39 = vadd.f32 %v649_v34, %v619_v27  ;;  %v4510_v27 = vld [vmem:[#allocation10 + $0x30] sm:$0xff]   ;;  %v4512_v31 = vld [vmem:[#allocation10 + $0x28] sm:$0xff]   ;;  %v4514_v34 = vld [vmem:[#allocation10 + $0x20] sm:$0xff]  }
  0xd0   : > { %v588_v41 = vrot.slane %v587_v36, 4  ;;  %v651_v44 = vadd.f32 %v650_v39, %v620_v32  ;;  %v4513_v32 = vld [vmem:[#allocation11 + $0x28] sm:$0xff]   ;;  %v4517_v39 = vld [vmem:[#allocation11 + $0x18] sm:$0xff]  }
  0xd2   : > { %v589_v46 = vadd.f32 %v588_v41, %v587_v36  ;;  %v652_v49 = vadd.f32 %v651_v44, %v621_v37  ;;  %v4515_v36 = vld [vmem:[#allocation11 + $0x20] sm:$0xff]   ;;  %v4516_v37 = vld [vmem:[#allocation10 + $0x18] sm:$0xff]   ;;  %v4518_v41 = vld [vmem:[#allocation10 + $0x10] sm:$0xff]  }
  0xd3   : > { %v4520_v44 = vld [vmem:[#allocation10 + $0x8] sm:$0xff]  }
  0xd4   : > { %v590_v51 = vrot.slane %v589_v46, 2  ;;  %v653_v54 = vadd.f32 %v652_v49, %v622_v42  ;;  %v4519_v42 = vld [vmem:[#allocation11 + $0x10] sm:$0xff]   ;;  %v4523_v49 = vld [vmem:[#allocation11] sm:$0xff]  }
  0xd6   : > { %v591_v56 = vadd.f32 %v590_v51, %v589_v46  ;;  %v654_v59 = vadd.f32 %v653_v54, %v623_v47  ;;  %v4521_v46 = vld [vmem:[#allocation11 + $0x8] sm:$0xff]   ;;  %v4522_v47 = vld [vmem:[#allocation10] sm:$0xff]   ;;  %v4524_v51 = vld [vmem:[#allocation13 + $0x38] sm:$0xff]  }
  0xd8   : > { %v592_v62 = vrot.slane %v591_v56, 1  ;;  %v655_v63 = vadd.f32 %v654_v59, %v624_v52 }
  0xda   : > { %v593_v0 = vadd.f32 %v592_v62, %v591_v56  ;;  %v656_v4 = vadd.f32 %v655_v63, %v625_v58 }
  0xdc   : > { %4005 = vmatmul.mubr.f32.vlgmr.msra.gmra.mxu0 %v593_v0  ;;  %v657_v8 = vrot.slane %v656_v4, 4 }
  0xdd   : > { %4043 = vmatpush3.bf16.msra.mxu0 %v4508_v21 }
  0xde   : > { %v658_v9 = vadd.f32 %v657_v8, %v656_v4  ;;  %4044 = vmatprep.subr.bf16.mxu0 %v4510_v27  ;;  %v829_v4 = vlaneseq }
  0xe0   : > { %v659_v12 = vrot.slane %v658_v9, 2  ;;  %v830_v8 = vshrl.u32 %v829_v4, 7 }
  0xe1   : > { %4045 = vmatpush3.bf16.msra.mxu0 %v4510_v27 }
  0xe2   : > { %v660_v15 = vadd.f32 %v659_v12, %v658_v9  ;;  %4046 = vmatprep.subr.bf16.mxu0 %v4512_v31  ;;  %v824_v9 = vld [vmem:[%s6088_s2] sm:$0x1]  ;;  %v831_v12 = vsub.s32 0, %v830_v8 }
  0xe4   : > { %v661_v1 = vrot.slane %v660_v15, 1 }
  0xe5   : > { %4047 = vmatpush3.bf16.msra.mxu0 %v4512_v31 }
  0xe6   : > { %v662_v20 = vadd.f32 %v661_v1, %v660_v15  ;;  %4048 = vmatprep.subr.bf16.mxu0 %v4514_v34 }
  0xe8   : > { %4040 = vmatmul.mubr.f32.vlgmr.msra.gmra.mxu1 %v662_v20  ;;  %v826_v20 = vld [vmem:[%s6137_s1] sm:$0x1] }
  0xe9   : > { %4091 = vmatpush3.bf16.msra.mxu1 %v4509_v22  ;;  %4049 = vmatpush3.bf16.msra.mxu0 %v4514_v34 }
  0xea   : > { %4092 = vmatprep.subr.bf16.mxu1 %v4511_v28  ;;  %4050 = vmatprep.subr.bf16.mxu0 %v4516_v37 }
  0xed   : > { %4093 = vmatpush3.bf16.msra.mxu1 %v4511_v28  ;;  %4051 = vmatpush3.bf16.msra.mxu0 %v4516_v37 }
  0xee   : > { %4094 = vmatprep.subr.bf16.mxu1 %v4513_v32  ;;  %4052 = vmatprep.subr.bf16.mxu0 %v4518_v41 }
  0xf1   : > { %4095 = vmatpush3.bf16.msra.mxu1 %v4513_v32  ;;  %4053 = vmatpush3.bf16.msra.mxu0 %v4518_v41 }
  0xf2   : > { %4096 = vmatprep.subr.bf16.mxu1 %v4515_v36  ;;  %4054 = vmatprep.subr.bf16.mxu0 %v4520_v44 }
  0xf5   : > { %4097 = vmatpush3.bf16.msra.mxu1 %v4515_v36  ;;  %4055 = vmatpush3.bf16.msra.mxu0 %v4520_v44 }
  0xf6   : > { %4098 = vmatprep.subr.bf16.mxu1 %v4517_v39  ;;  %4056 = vmatprep.subr.bf16.mxu0 %v4522_v47 }
  0xf9   : > { %4099 = vmatpush3.bf16.msra.mxu1 %v4517_v39  ;;  %4057 = vmatpush3.bf16.msra.mxu0 %v4522_v47 }
  0xfa   : > { %4100 = vmatprep.subr.bf16.mxu1 %v4519_v42  ;;  %4138 = vmatprep.subr.bf16.mxu0 %v4524_v51 }
  0xfd   : > { %4101 = vmatpush3.bf16.msra.mxu1 %v4519_v42 }
  0xfe   : > { %4102 = vmatprep.subr.bf16.mxu1 %v4521_v46 }
 0x101   : > { %4103 = vmatpush3.bf16.msra.mxu1 %v4521_v46 }
 0x102   : > { %4104 = vmatprep.subr.bf16.mxu1 %v4523_v49 }
 0x105   : > { %4105 = vmatpush3.bf16.msra.mxu1 %v4523_v49 }
 0x19c   : > { %v745_v52 = vpop.f32.mrf.mxu0 }
 0x19d   : > { %v819_v56 = vmul.f32 %v745_v52, %v745_v52 }
 0x19e   : > { %v4006_v54 = vpop.f32.mrf.mxu0 }
 0x1a8   : > { %v815_v58 = vpop.f32.mrf.mxu1 }
 0x1a9   : > { %v820_v59 = vsub.f32 %v815_v58, %v819_v56 }
 0x1aa   : > { %v4041_v62 = vpop.f32.mrf.mxu1 }
 0x1ab   : > { %v821_v63 = vmax.f32 %v820_v59, 0.0  ;;  %v4527_v62 = vld [vmem:[#allocation13 + $0x20] sm:$0xff]  }
 0x1ad   : > { %v822_v0 = vadd.f32 1e-05, %v821_v63 }
 0x1af   : > { %4540 = vrsqrt.f32 %v822_v0 }
 0x1bc   : > { %v4541_v15 = vpop.eup %4540 }
 0x1bd   : > { %v825_v1 = vmul.f32 %v4541_v15, %v824_v9 }
 0x1bf   : > { %v827_v21 = vmul.f32 %v825_v1, %v745_v52  ;;  %v5511_v22 = vrot.slane %v825_v1, %v831_v12 }
 0x1c1   : > { %v828_v27 = vsub.f32 %v826_v20, %v827_v21  ;;  %v833_v28 = vmul.f32 %v5511_v22, %v5286_v5  ;;  %v834_v32 = vmul.f32 %v5511_v22, %v5289_v6  ;;  %v835_v34 = vmul.f32 %v5511_v22, %v5292_v7 }
 0x1c2   : > { %v836_v36 = vmul.f32 %v5511_v22, %v5299_v10  ;;  %v837_v37 = vmul.f32 %v5511_v22, %v5305_v13  ;;  %v838_v39 = vmul.f32 %v5511_v22, %v5311_v16  ;;  %v4525_v13 = vld [vmem:[#allocation13 + $0x30] sm:$0xff]   ;;  %v839_v47 = vmul.f32 %v5511_v22, %v5317_v19  ;;  %v4526_v19 = vld [vmem:[#allocation13 + $0x28] sm:$0xff]  }
 0x1c3   : > { %v5515_v31 = vrot.slane %v828_v27, %v831_v12  ;;  %v840_v49 = vmul.f32 %v5511_v22, %v5323_v23  ;;  %v841_v52 = vmul.f32 %v5511_v22, %v5326_v24  ;;  %v842_v54 = vmul.f32 %v5511_v22, %v5336_v29 }
 0x1c4   : > { %v843_v29 = vmul.f32 %v5511_v22, %v5344_v33  ;;  %v844_v63 = vmul.f32 %v5511_v22, %v5352_v38  ;;  %v845_v0 = vmul.f32 %v5511_v22, %v5360_v43  ;;  %v846_v4 = vmul.f32 %v5511_v22, %v5368_v48  ;;  %v4528_v38 = vld [vmem:[#allocation13 + $0x18] sm:$0xff]   ;;  %v4529_v43 = vld [vmem:[#allocation13 + $0x10] sm:$0xff]  }
 0x1c5   : > { %v871_v41 = vadd.f32 %v5515_v31, %v833_v28  ;;  %v872_v5 = vadd.f32 %v5515_v31, %v834_v32  ;;  %v873_v42 = vadd.f32 %v5515_v31, %v835_v34  ;;  %v874_v6 = vadd.f32 %v5515_v31, %v836_v36 }
 0x1c6   : > { %v875_v44 = vadd.f32 %v5515_v31, %v837_v37  ;;  %v876_v7 = vadd.f32 %v5515_v31, %v838_v39  ;;  %v877_v56 = vadd.f32 %v5515_v31, %v839_v47  ;;  %v878_v58 = vadd.f32 %v5515_v31, %v840_v49 }
 0x1c7   : > { %v5533_v46 = vpack.c.bf16 %v872_v5, %v871_v41  ;;  %v5535_v10 = vpack.c.bf16 %v874_v6, %v873_v42  ;;  %v879_v59 = vadd.f32 %v5515_v31, %v841_v52  ;;  %v880_v23 = vadd.f32 %v5515_v31, %v842_v54 }
 0x1c8   : > { %v5539_v16 = vpack.c.bf16 %v876_v7, %v875_v44  ;;  %v881_v8 = vadd.f32 %v5515_v31, %v843_v29  ;;  %v882_v9 = vadd.f32 %v5515_v31, %v844_v63  ;;  %v883_v33 = vadd.f32 %v5515_v31, %v845_v0 }
 0x1c9   : > { %4058 = vmatprep.mubr.bf16.mxu0 %v5533_v46  ;;  %4106 = vmatprep.mubr.bf16.mxu1 %v5533_v46  ;;  %v5559_v24 = vpack.c.bf16 %v880_v23, %v879_v59  ;;  %v884_v12 = vadd.f32 %v5515_v31, %v846_v4  ;;  %v847_v48 = vmul.f32 %v5511_v22, %v5376_v53 }
 0x1ca   : > { %4059 = vmatmul.mubr.bf16.vlgmr.msra.gmra.mxu0 %v5535_v10  ;;  %4107 = vmatmul.mubr.bf16.vlgmr.msra.gmra.mxu1 %v5535_v10  ;;  %v5577_v15 = vpack.c.bf16 %v882_v9, %v881_v8  ;;  %v848_v20 = vmul.f32 %v5511_v22, %v5384_v57  ;;  %v849_v21 = vmul.f32 %v5511_v22, %v5392_v61  ;;  %v4530_v57 = vld [vmem:[#allocation13 + $0x8] sm:$0xff]   ;;  %v4531_v61 = vld [vmem:[#allocation13] sm:$0xff]  }
 0x1cb   : > { %4139 = vmatpush3.bf16.msra.mxu0 %v4524_v51  ;;  %4062 = vmatprep.mubr.bf16.mxu0 %v5539_v16  ;;  %v5557_v51 = vpack.c.bf16 %v878_v58, %v877_v56  ;;  %v5579_v1 = vpack.c.bf16 %v884_v12, %v883_v33  ;;  %v850_v27 = vmul.f32 %v5511_v22, %v5399_v2  ;;  %v5661_v9 = vld [vmem:[%s6138_s6] ss:$0 sm:$0xff] }
 0x1cc   : > { %4110 = vmatprep.mubr.bf16.mxu1 %v5539_v16  ;;  %4140 = vmatprep.subr.bf16.mxu0 %v4525_v13  ;;  %v885_v28 = vadd.f32 %v5515_v31, %v847_v48  ;;  %v886_v32 = vadd.f32 %v5515_v31, %v848_v20  ;;  %v887_v53 = vadd.f32 %v5515_v31, %v849_v21 }
 0x1cd   : > { %v888_v34 = vadd.f32 %v5515_v31, %v850_v27  ;;  %v851_v2 = vmul.f32 %v5511_v22, %v5409_v14  ;;  %v852_v39 = vmul.f32 %v5511_v22, %v5415_v18  ;;  %v853_v41 = vmul.f32 %v5511_v22, %v5421_v25 }
 0x1ce   : > { %v5597_v36 = vpack.c.bf16 %v886_v32, %v885_v28  ;;  %v854_v5 = vmul.f32 %v5511_v22, %v5427_v30  ;;  %v855_v25 = vmul.f32 %v5511_v22, %v5433_v35  ;;  %v856_v30 = vmul.f32 %v5511_v22, %v5439_v40 }
 0x1cf   : > { %4141 = vmatpush3.bf16.msra.mxu0 %v4525_v13  ;;  %v5599_v37 = vpack.c.bf16 %v888_v34, %v887_v53  ;;  %v889_v42 = vadd.f32 %v5515_v31, %v851_v2  ;;  %v890_v6 = vadd.f32 %v5515_v31, %v852_v39  ;;  %v891_v14 = vadd.f32 %v5515_v31, %v853_v41 }
 0x1d0   : > { %4142 = vmatprep.subr.bf16.mxu0 %v4526_v19  ;;  %v892_v44 = vadd.f32 %v5515_v31, %v854_v5  ;;  %v857_v13 = vmul.f32 %v5511_v22, %v5445_v45  ;;  %v858_v47 = vmul.f32 %v5511_v22, %v5451_v50  ;;  %v893_v49 = vadd.f32 %v5515_v31, %v855_v25 }
 0x1d1   : > { %v912_v18 = vpack.c.bf16 %v890_v6, %v889_v42  ;;  %v894_v52 = vadd.f32 %v5515_v31, %v856_v30  ;;  %v859_v40 = vmul.f32 %v5511_v22, %v5457_v55  ;;  %v860_v45 = vmul.f32 %v5511_v22, %v5463_v60 }
 0x1d2   : > { %4063 = vmatmul.mubr.bf16.gmra.mxu0 %v5557_v51  ;;  %4111 = vmatmul.mubr.bf16.gmra.mxu1 %v5557_v51  ;;  %v913_v7 = vpack.c.bf16 %v892_v44, %v891_v14  ;;  %v895_v54 = vadd.f32 %v5515_v31, %v857_v13  ;;  %v896_v56 = vadd.f32 %v5515_v31, %v858_v47 }
 0x1d3   : > { %4066 = vmatprep.mubr.bf16.mxu0 %v5559_v24  ;;  %4114 = vmatprep.mubr.bf16.mxu1 %v5559_v24  ;;  %v914_v35 = vpack.c.bf16 %v894_v52, %v893_v49  ;;  %v861_v50 = vmul.f32 %v5511_v22, %v5469_v3  ;;  %v897_v59 = vadd.f32 %v5515_v31, %v859_v40 }
 0x1d4   : > { %4143 = vmatpush3.bf16.msra.mxu0 %v4526_v19  ;;  %v915_v58 = vpack.c.bf16 %v896_v56, %v895_v54  ;;  %v862_v19 = vmul.f32 %v5511_v22, %v5475_v11  ;;  %v898_v23 = vadd.f32 %v5515_v31, %v860_v45  ;;  %v863_v60 = vmul.f32 %v5511_v22, %v5481_v17  ;;  %v4532_v17 = vld [vmem:[#allocation14 + $0x38] sm:$0xff]  }
 0x1d5   : > { %4144 = vmatprep.subr.bf16.mxu0 %v4527_v62  ;;  %v864_v3 = vmul.f32 %v5511_v22, %v5487_v26  ;;  %4186 = vmatprep.subr.bf16.mxu1 %v4532_v17  ;;  %v4533_v26 = vld [vmem:[#allocation14 + $0x30] sm:$0xff]   ;;  %v4534_v22 = vld [vmem:[#allocation14 + $0x28] sm:$0xff]  }
 0x1d6   : > { %v900_v29 = vadd.f32 %v5515_v31, %v862_v19  ;;  %v916_v55 = vpack.c.bf16 %v898_v23, %v897_v59  ;;  %v901_v11 = vadd.f32 %v5515_v31, %v863_v60  ;;  %4187 = vmatpush3.bf16.msra.mxu1 %v4532_v17 }
 0x1d7   : > { %v902_v0 = vadd.f32 %v5515_v31, %v864_v3  ;;  %4188 = vmatprep.subr.bf16.mxu1 %v4533_v26 }
 0x1d8   : > { %4145 = vmatpush3.bf16.msra.mxu0 %v4527_v62  ;;  %v899_v62 = vadd.f32 %v5515_v31, %v861_v50  ;;  %v4535_v31 = vld [vmem:[#allocation14 + $0x20] sm:$0xff]  }
 0x1d9   : > { %4146 = vmatprep.subr.bf16.mxu0 %v4528_v38  ;;  %v918_v4 = vpack.c.bf16 %v902_v0, %v901_v11 }
 0x1da   : > { %4067 = vmatmul.mubr.bf16.gmra.mxu0 %v5577_v15  ;;  %4115 = vmatmul.mubr.bf16.gmra.mxu1 %v5577_v15  ;;  %v917_v63 = vpack.c.bf16 %v900_v29, %v899_v62 }
 0x1db   : > { %4070 = vmatprep.mubr.bf16.mxu0 %v5579_v1  ;;  %4118 = vmatprep.mubr.bf16.mxu1 %v5579_v1 }
 0x1dc   : > { %4147 = vmatpush3.bf16.msra.mxu0 %v4528_v38  ;;  %4189 = vmatpush3.bf16.msra.mxu1 %v4533_v26 }
 0x1dd   : > { %4148 = vmatprep.subr.bf16.mxu0 %v4529_v43  ;;  %4190 = vmatprep.subr.bf16.mxu1 %v4534_v22 }
 0x1e0   : > { %4149 = vmatpush3.bf16.msra.mxu0 %v4529_v43  ;;  %4191 = vmatpush3.bf16.msra.mxu1 %v4534_v22 }
 0x1e1   : > { %4150 = vmatprep.subr.bf16.mxu0 %v4530_v57  ;;  %4192 = vmatprep.subr.bf16.mxu1 %v4535_v31 }
 0x1e2   : > { %4071 = vmatmul.mubr.bf16.gmra.mxu0 %v5597_v36  ;;  %4119 = vmatmul.mubr.bf16.gmra.mxu1 %v5597_v36 }
 0x1e3   : > { %4074 = vmatprep.mubr.bf16.mxu0 %v5599_v37  ;;  %4122 = vmatprep.mubr.bf16.mxu1 %v5599_v37 }
 0x1e4   : > { %4151 = vmatpush3.bf16.msra.mxu0 %v4530_v57  ;;  %4193 = vmatpush3.bf16.msra.mxu1 %v4535_v31  ;;  %v5712_v31 = vld [vmem:[%s6139_s4] ss:$0 sm:$0xff] }
 0x1e5   : > { %4152 = vmatprep.subr.bf16.mxu0 %v4531_v61 }
 0x1e8   : > { %4153 = vmatpush3.bf16.msra.mxu0 %v4531_v61 }
 0x1ea   : > { %4075 = vmatmul.mubr.bf16.gmra.mxu0 %v912_v18  ;;  %4123 = vmatmul.mubr.bf16.gmra.mxu1 %v912_v18 }
 0x1eb   : > { %4078 = vmatprep.mubr.bf16.mxu0 %v913_v7  ;;  %4126 = vmatprep.mubr.bf16.mxu1 %v913_v7 }
 0x1f2   : > { %4079 = vmatmul.mubr.bf16.gmra.mxu0 %v914_v35  ;;  %4127 = vmatmul.mubr.bf16.gmra.mxu1 %v914_v35 }
 0x1f3   : > { %4082 = vmatprep.mubr.bf16.mxu0 %v915_v58  ;;  %4130 = vmatprep.mubr.bf16.mxu1 %v915_v58 }
 0x1fa   : > { %4083 = vmatmul.mubr.bf16.gmra.mxu0 %v916_v55  ;;  %4131 = vmatmul.mubr.bf16.gmra.mxu1 %v916_v55 }
 0x1fb   : > { %4086 = vmatprep.mubr.bf16.mxu0 %v917_v63  ;;  %4134 = vmatprep.mubr.bf16.mxu1 %v917_v63 }
 0x202   : > { %4087 = vmatmul.mubr.bf16.gmra.mxu0 %v918_v4  ;;  %4135 = vmatmul.mubr.bf16.gmra.mxu1 %v918_v4 }
 0x203   : > { %4154 = vmatprep.mubr.bf16.mxu0 %v5533_v46  ;;  %v4536_v46 = vld [vmem:[#allocation14 + $0x18] sm:$0xff]  }
 0x204   : > { %4194 = vmatprep.subr.bf16.mxu1 %v4536_v46 }
 0x205   : > { %4195 = vmatpush3.bf16.msra.mxu1 %v4536_v46 }
 0x20a   : > { %4155 = vmatmul.mubr.bf16.vlgmr.msra.gmra.mxu0 %v5535_v10  ;;  %v4537_v10 = vld [vmem:[#allocation14 + $0x10] sm:$0xff]  }
 0x20b   : > { %4158 = vmatprep.mubr.bf16.mxu0 %v5539_v16  ;;  %4196 = vmatprep.subr.bf16.mxu1 %v4537_v10  ;;  %v4538_v16 = vld [vmem:[#allocation14 + $0x8] sm:$0xff]  }
 0x20c   : > { %4197 = vmatpush3.bf16.msra.mxu1 %v4537_v10 }
 0x20d   : > { %4198 = vmatprep.subr.bf16.mxu1 %v4538_v16 }
 0x210   : > { %4199 = vmatpush3.bf16.msra.mxu1 %v4538_v16 }
 0x212   : > { %4159 = vmatmul.mubr.bf16.gmra.mxu0 %v5557_v51  ;;  %v4539_v51 = vld [vmem:[#allocation14] sm:$0xff]  }
 0x213   : > { %4162 = vmatprep.mubr.bf16.mxu0 %v5559_v24  ;;  %4200 = vmatprep.subr.bf16.mxu1 %v4539_v51 }
 0x214   : > { %4201 = vmatpush3.bf16.msra.mxu1 %v4539_v51 }
 0x21a   : > { %4163 = vmatmul.mubr.bf16.gmra.mxu0 %v5577_v15 }
 0x21b   : > { %4166 = vmatprep.mubr.bf16.mxu0 %v5579_v1 }
 0x222   : > { %4167 = vmatmul.mubr.bf16.gmra.mxu0 %v5597_v36 }
 0x223   : > { %4170 = vmatprep.mubr.bf16.mxu0 %v5599_v37 }
 0x22a   : > { %4171 = vmatmul.mubr.bf16.gmra.mxu0 %v912_v18 }
 0x22b   : > { %4174 = vmatprep.mubr.bf16.mxu0 %v913_v7 }
 0x232   : > { %4175 = vmatmul.mubr.bf16.gmra.mxu0 %v914_v35 }
 0x233   : > { %4178 = vmatprep.mubr.bf16.mxu0 %v915_v58 }
 0x23a   : > { %4179 = vmatmul.mubr.bf16.gmra.mxu0 %v916_v55 }
 0x23b   : > { %4182 = vmatprep.mubr.bf16.mxu0 %v917_v63 }
 0x242   : > { %4183 = vmatmul.mubr.bf16.gmra.mxu0 %v918_v4 }
 0x28a   : > { %v4060_v24 = vpop.f32.mrf.mxu0  ;;  %v5656_v8 = vpop.f32.mrf.mxu1 }
 0x28b   : > { %v1033_v1 = vadd.f32 %v4060_v24, %v5661_v9 }
 0x28c   : > { %v1024_v33 = vpop.f32.mrf.mxu0  ;;  %v5663_v12 = vpop.f32.mrf.mxu1 }
 0x28d   : > { %v1025_v21 = vadd.f32 %v5661_v9, %v1024_v33  ;;  %v1417_v16 = vadd.f32 %v5712_v31, %v5663_v12 }
 0x28e   : > { %v4061_v38 = vpop.f32.mrf.mxu0  ;;  %v5665_v15 = vpop.f32.mrf.mxu1 }
 0x28f   : > { %v1036_v43 = vadd.f32 %v4061_v38, %v5661_v9 }
 0x290   : > { %v1027_v48 = vpop.f32.mrf.mxu0  ;;  %v5669_v20 = vpop.f32.mrf.mxu1 }
 0x291   : > { %v3596_v27 = vpack.c.bf16 %v1036_v43, %v1033_v1  ;;  %v1028_v28 = vadd.f32 %v5661_v9, %v1027_v48  ;;  %v1420_v48 = vadd.f32 %v5712_v31, %v5669_v20  ;;  %v1425_v20 = vadd.f32 %v5656_v8, %v5712_v31 }
 0x292   : > { %v4064_v32 = vpop.f32.mrf.mxu0  ;;  %v5673_v53 = vpop.f32.mrf.mxu1 }
 0x293   : > { %3748 = vst [vmem:[#allocation2 + $0x8] sm:$0xff] %v3596_v27   ;;  %v3591_v34 = vpack.c.bf16 %v1028_v28, %v1025_v21  ;;  %v1049_v2 = vadd.f32 %v4064_v32, %v5661_v9 }
 0x294   : > { %v1040_v57 = vpop.f32.mrf.mxu0  ;;  %v5675_v36 = vpop.f32.mrf.mxu1 }
 0x295   : > { %3592 = vst [vmem:[#allocation2] sm:$0xff] %v3591_v34   ;;  %v1041_v42 = vadd.f32 %v5661_v9, %v1040_v57 }
 0x296   : > { %v4065_v37 = vpop.f32.mrf.mxu0  ;;  %v5677_v61 = vpop.f32.mrf.mxu1 }
 0x297   : > { %v1052_v39 = vadd.f32 %v4065_v37, %v5661_v9 }
 0x298   : > { %v1043_v41 = vpop.f32.mrf.mxu0  ;;  %v5681_v5 = vpop.f32.mrf.mxu1 }
 0x299   : > { %v3606_v6 = vpack.c.bf16 %v1052_v39, %v1049_v2  ;;  %v1044_v14 = vadd.f32 %v5661_v9, %v1043_v41 }
 0x29a   : > { %v4068_v44 = vpop.f32.mrf.mxu0  ;;  %v5685_v18 = vpop.f32.mrf.mxu1 }
 0x29b   : > { %3750 = vst [vmem:[#allocation2 + $0x18] sm:$0xff] %v3606_v6   ;;  %v3601_v7 = vpack.c.bf16 %v1044_v14, %v1041_v42  ;;  %v1065_v49 = vadd.f32 %v4068_v44, %v5661_v9 }
 0x29c   : > { %v1056_v25 = vpop.f32.mrf.mxu0  ;;  %v5687_v30 = vpop.f32.mrf.mxu1 }
 0x29d   : > { %3749 = vst [vmem:[#allocation2 + $0x10] sm:$0xff] %v3601_v7   ;;  %v1057_v35 = vadd.f32 %v5661_v9, %v1056_v25 }
 0x29e   : > { %v4069_v13 = vpop.f32.mrf.mxu0  ;;  %v5689_v47 = vpop.f32.mrf.mxu1 }
 0x29f   : > { %v1068_v52 = vadd.f32 %v4069_v13, %v5661_v9 }
 0x2a0   : > { %v1059_v54 = vpop.f32.mrf.mxu0  ;;  %v5693_v56 = vpop.f32.mrf.mxu1 }
 0x2a1   : > { %v3616_v58 = vpack.c.bf16 %v1068_v52, %v1065_v49  ;;  %v1060_v40 = vadd.f32 %v5661_v9, %v1059_v54  ;;  %v1428_v54 = vadd.f32 %v5665_v15, %v5712_v31 }
 0x2a2   : > { %v4072_v45 = vpop.f32.mrf.mxu0  ;;  %v5697_v50 = vpop.f32.mrf.mxu1 }
 0x2a3   : > { %3752 = vst [vmem:[#allocation2 + $0x28] sm:$0xff] %v3616_v58   ;;  %v3611_v19 = vpack.c.bf16 %v1060_v40, %v1057_v35  ;;  %v1081_v55 = vadd.f32 %v4072_v45, %v5661_v9 }
 0x2a4   : > { %v1072_v59 = vpop.f32.mrf.mxu0  ;;  %v5699_v23 = vpop.f32.mrf.mxu1 }
 0x2a5   : > { %3751 = vst [vmem:[#allocation2 + $0x20] sm:$0xff] %v3611_v19   ;;  %v1073_v11 = vadd.f32 %v5661_v9, %v1072_v59 }
 0x2a6   : > { %v4073_v62 = vpop.f32.mrf.mxu0  ;;  %v5701_v29 = vpop.f32.mrf.mxu1 }
 0x2a7   : > { %v1084_v63 = vadd.f32 %v4073_v62, %v5661_v9 }
 0x2a8   : > { %v1075_v60 = vpop.f32.mrf.mxu0  ;;  %v5705_v3 = vpop.f32.mrf.mxu1 }
 0x2a9   : > { %v3626_v0 = vpack.c.bf16 %v1084_v63, %v1081_v55  ;;  %v1076_v4 = vadd.f32 %v5661_v9, %v1075_v60  ;;  %v1433_v63 = vadd.f32 %v5712_v31, %v5675_v36 }
 0x2aa   : > { %v4076_v17 = vpop.f32.mrf.mxu0  ;;  %v4124_v26 = vpop.f32.mrf.mxu1 }
 0x2ab   : > { %3754 = vst [vmem:[#allocation2 + $0x38] sm:$0xff] %v3626_v0   ;;  %v3621_v22 = vpack.c.bf16 %v1076_v4, %v1073_v11  ;;  %v1097_v38 = vadd.f32 %v4076_v17, %v5661_v9  ;;  %v1489_v2 = vadd.f32 %v4124_v26, %v5712_v31 }
 0x2ac   : > { %v1088_v46 = vpop.f32.mrf.mxu0  ;;  %v1480_v10 = vpop.f32.mrf.mxu1 }
 0x2ad   : > { %3753 = vst [vmem:[#allocation2 + $0x30] sm:$0xff] %v3621_v22   ;;  %v1481_v51 = vadd.f32 %v5712_v31, %v1480_v10  ;;  %v1089_v28 = vadd.f32 %v5661_v9, %v1088_v46  ;;  %v4400_v13 = vpack.i.bf16 %v1489_v2, %v1425_v20  ;;  %v1436_v22 = vadd.f32 %v5712_v31, %v5681_v5 }
 0x2ae   : > { %v4077_v24 = vpop.f32.mrf.mxu0  ;;  %v4125_v33 = vpop.f32.mrf.mxu1 }
 0x2af   : > { %v1100_v1 = vadd.f32 %v4077_v24, %v5661_v9  ;;  %v4396_v43 = vpack.i.bf16 %v1481_v51, %v1417_v16  ;;  %v1492_v44 = vadd.f32 %v4125_v33, %v5712_v31 }
 0x2b0   : > { %v1091_v21 = vpop.f32.mrf.mxu0  ;;  %v1483_v27 = vpop.f32.mrf.mxu1 }
 0x2b1   : > { %v3636_v32 = vpack.c.bf16 %v1100_v1, %v1097_v38  ;;  %v1092_v12 = vadd.f32 %v5661_v9, %v1091_v21  ;;  %v1484_v34 = vadd.f32 %v5712_v31, %v1483_v27  ;;  %4397 = vxpose.xlu0.b32.start [1/16] %v4396_v43, 128  ;;  %v4402_v59 = vpack.i.bf16 %v1492_v44, %v1428_v54 }
 0x2b2   : > { %v4080_v57 = vpop.f32.mrf.mxu0  ;;  %v4128_v37 = vpop.f32.mrf.mxu1  ;;  %v1441_v43 = vadd.f32 %v5673_v53, %v5712_v31 }
 0x2b3   : > { %3756 = vst [vmem:[#allocation2 + $0x48] sm:$0xff] %v3636_v32   ;;  %v3631_v39 = vpack.c.bf16 %v1092_v12, %v1089_v28  ;;  %v4398_v41 = vpack.i.bf16 %v1484_v34, %v1420_v48  ;;  %v1113_v7 = vadd.f32 %v4080_v57, %v5661_v9  ;;  %v1505_v51 = vadd.f32 %v4128_v37, %v5712_v31 }
 0x2b4   : > { %v1104_v42 = vpop.f32.mrf.mxu0  ;;  %v1496_v6 = vpop.f32.mrf.mxu1  ;;  %v1444_v34 = vadd.f32 %v5677_v61, %v5712_v31 }
 0x2b5   : > { %3755 = vst [vmem:[#allocation2 + $0x40] sm:$0xff] %v3631_v39   ;;  %4399 = vxpose.xlu0.b32.cont [2/16] %v4398_v41, 128  ;;  %v1105_v35 = vadd.f32 %v5661_v9, %v1104_v42  ;;  %v1497_v45 = vadd.f32 %v5712_v31, %v1496_v6  ;;  %v4408_v28 = vpack.i.bf16 %v1505_v51, %v1441_v43 }
 0x2b6   : > { %v4081_v14 = vpop.f32.mrf.mxu0  ;;  %v4129_v49 = vpop.f32.mrf.mxu1 }
 0x2b7   : > { %v1116_v25 = vadd.f32 %v4081_v14, %v5661_v9  ;;  %v4404_v4 = vpack.i.bf16 %v1497_v45, %v1433_v63  ;;  %v1508_v48 = vadd.f32 %v4129_v49, %v5712_v31  ;;  %v1449_v14 = vadd.f32 %v5712_v31, %v5687_v30 }
 0x2b8   : > { %v1107_v52 = vpop.f32.mrf.mxu0  ;;  %v1499_v62 = vpop.f32.mrf.mxu1 }
 0x2b9   : > { %v3646_v58 = vpack.c.bf16 %v1116_v25, %v1113_v7  ;;  %v1108_v8 = vadd.f32 %v5661_v9, %v1107_v52  ;;  %4401 = vxpose.xlu0.b32.cont [3/16] %v4400_v13, 128  ;;  %v1500_v60 = vadd.f32 %v5712_v31, %v1499_v62  ;;  %v4410_v42 = vpack.i.bf16 %v1508_v48, %v1444_v34 }
 0x2ba   : > { %v4084_v40 = vpop.f32.mrf.mxu0  ;;  %v4132_v17 = vpop.f32.mrf.mxu1  ;;  %v1452_v52 = vadd.f32 %v5712_v31, %v5693_v56  ;;  %v1468_v48 = vadd.f32 %v5712_v31, %v5705_v3 }
 0x2bb   : > { %3758 = vst [vmem:[#allocation2 + $0x58] sm:$0xff] %v3646_v58   ;;  %v3641_v19 = vpack.c.bf16 %v1108_v8, %v1105_v35  ;;  %v1129_v11 = vadd.f32 %v4084_v40, %v5661_v9  ;;  %v4406_v33 = vpack.i.bf16 %v1500_v60, %v1436_v22  ;;  %v1521_v8 = vadd.f32 %v4132_v17, %v5712_v31 }
 0x2bc   : > { %v1120_v55 = vpop.f32.mrf.mxu0  ;;  %v1512_v38 = vpop.f32.mrf.mxu1 }
 0x2bd   : > { %3757 = vst [vmem:[#allocation2 + $0x50] sm:$0xff] %v3641_v19   ;;  %4403 = vxpose.xlu0.b32.cont [4/16] %v4402_v59, 128  ;;  %v1121_v46 = vadd.f32 %v5661_v9, %v1120_v55  ;;  %v1513_v39 = vadd.f32 %v5712_v31, %v1512_v38  ;;  %v1457_v55 = vadd.f32 %v5685_v18, %v5712_v31 }
 0x2be   : > { %v4085_v15 = vpop.f32.mrf.mxu0  ;;  %v4133_v32 = vpop.f32.mrf.mxu1 }
 0x2bf   : > { %v1132_v0 = vadd.f32 %v4085_v15, %v5661_v9  ;;  %v4412_v7 = vpack.i.bf16 %v1513_v39, %v1449_v14  ;;  %v1524_v63 = vadd.f32 %v4133_v32, %v5712_v31  ;;  %v4416_v15 = vpack.i.bf16 %v1521_v8, %v1457_v55 }
 0x2c0   : > { %v1123_v26 = vpop.f32.mrf.mxu0  ;;  %v1515_v6 = vpop.f32.mrf.mxu1 }
 0x2c1   : > { %v3656_v10 = vpack.c.bf16 %v1132_v0, %v1129_v11  ;;  %v1124_v36 = vadd.f32 %v5661_v9, %v1123_v26  ;;  %4405 = vxpose.xlu0.b32.cont [5/16] %v4404_v4, 128  ;;  %v1516_v44 = vadd.f32 %v5712_v31, %v1515_v6  ;;  %v1460_v4 = vadd.f32 %v5689_v47, %v5712_v31 }
 0x2c2   : > { %v4088_v16 = vpop.f32.mrf.mxu0  ;;  %v4136_v25 = vpop.f32.mrf.mxu1  ;;  %v1476_v6 = vadd.f32 %v5701_v29, %v5712_v31 }
 0x2c3   : > { %3760 = vst [vmem:[#allocation2 + $0x68] sm:$0xff] %v3656_v10   ;;  %v3651_v24 = vpack.c.bf16 %v1124_v36, %v1121_v46  ;;  %v1145_v21 = vadd.f32 %v4088_v16, %v5661_v9  ;;  %v4414_v45 = vpack.i.bf16 %v1516_v44, %v1452_v52  ;;  %v4418_v36 = vpack.i.bf16 %v1524_v63, %v1460_v4 }
 0x2c4   : > { %v1136_v1 = vpop.f32.mrf.mxu0  ;;  %v1528_v19 = vpop.f32.mrf.mxu1  ;;  %v1537_v32 = vadd.f32 %v4136_v25, %v5712_v31 }
 0x2c5   : > { %3759 = vst [vmem:[#allocation2 + $0x60] sm:$0xff] %v3651_v24   ;;  %4407 = vxpose.xlu0.b32.cont [6/16] %v4406_v33, 128  ;;  %v1137_v57 = vadd.f32 %v5661_v9, %v1136_v1  ;;  %v1529_v46 = vadd.f32 %v5712_v31, %v1528_v19  ;;  %v1465_v33 = vadd.f32 %v5712_v31, %v5699_v23 }
 0x2c6   : > { %v4089_v5 = vpop.f32.mrf.mxu0  ;;  %v4137_v60 = vpop.f32.mrf.mxu1 }
 0x2c7   : > { %v1148_v27 = vadd.f32 %v4089_v5, %v5661_v9  ;;  %v4420_v1 = vpack.i.bf16 %v1529_v46, %v1465_v33 }
 0x2c8   : > { %v1139_v12 = vpop.f32.mrf.mxu0  ;;  %v1531_v16 = vpop.f32.mrf.mxu1 }
 0x2c9   : > { %v3666_v37 = vpack.c.bf16 %v1148_v27, %v1145_v21  ;;  %v1140_v53 = vadd.f32 %v5661_v9, %v1139_v12  ;;  %4409 = vxpose.xlu0.b32.cont [7/16] %v4408_v28, 128  ;;  %v5761_v9 = vld [vmem:[%s6140_s17] ss:$0 sm:$0xff]  ;;  %v1532_v38 = vadd.f32 %v5712_v31, %v1531_v16 }
 0x2ca   : > { %v4156_v2 = vpop.f32.mrf.mxu0 }
 0x2cb   : > { %3762 = vst [vmem:[#allocation2 + $0x78] sm:$0xff] %v3666_v37   ;;  %v3661_v41 = vpack.c.bf16 %v1140_v53, %v1137_v57  ;;  %v1833_v35 = vadd.f32 %v4156_v2, %v5761_v9  ;;  %v4422_v34 = vpack.i.bf16 %v1532_v38, %v1468_v48  ;;  %v1473_v53 = vadd.f32 %v5697_v50, %v5712_v31 }
 0x2cc   : > { %v1824_v20 = vpop.f32.mrf.mxu0  ;;  %v1540_v2 = vadd.f32 %v4137_v60, %v5712_v31 }
 0x2cd   : > { %3761 = vst [vmem:[#allocation2 + $0x70] sm:$0xff] %v3661_v41   ;;  %4411 = vxpose.xlu0.b32.cont [8/16] %v4410_v42, 128  ;;  %v1825_v30 = vadd.f32 %v5761_v9, %v1824_v20  ;;  %v4424_v39 = vpack.i.bf16 %v1537_v32, %v1473_v53 }
 0x2ce   : > { %v4157_v61 = vpop.f32.mrf.mxu0 }
 0x2cf   : > { %v1836_v13 = vadd.f32 %v4157_v61, %v5761_v9 }
 0x2d0   : > { %v1827_v49 = vpop.f32.mrf.mxu0 }
 0x2d1   : > { %v1828_v54 = vadd.f32 %v5761_v9, %v1827_v49  ;;  %4413 = vxpose.xlu0.b32.cont [9/16] %v4412_v7, 128  ;;  %v1952_v59 = vpack.c.bf16 %v1836_v13, %v1833_v35  ;;  %v4426_v7 = vpack.i.bf16 %v1540_v2, %v1476_v6 }
 0x2d2   : > { %v4160_v58 = vpop.f32.mrf.mxu0 }
 0x2d3   : > { %v1951_v40 = vpack.c.bf16 %v1828_v54, %v1825_v30  ;;  %v1849_v18 = vadd.f32 %v4160_v58, %v5761_v9 }
 0x2d4   : > { %v1840_v62 = vpop.f32.mrf.mxu0 }
 0x2d5   : > { %4415 = vxpose.xlu0.b32.cont [10/16] %v4414_v45, 128  ;;  %4202 = vmatprep.mubr.bf16.mxu1 %v1951_v40  ;;  %v1841_v17 = vadd.f32 %v5761_v9, %v1840_v62 }
 0x2d6   : > { %v4161_v56 = vpop.f32.mrf.mxu0  ;;  %4203 = vmatmul.mubr.bf16.vlgmr.msra.gmra.mxu1 %v1952_v59 }
 0x2d7   : > { %v1852_v11 = vadd.f32 %v4161_v56, %v5761_v9 }
 0x2d8   : > { %v1843_v0 = vpop.f32.mrf.mxu0 }
 0x2d9   : > { %v1844_v26 = vadd.f32 %v5761_v9, %v1843_v0  ;;  %4417 = vxpose.xlu0.b32.cont [11/16] %v4416_v15, 128  ;;  %v1954_v51 = vpack.c.bf16 %v1852_v11, %v1849_v18 }
 0x2da   : > { %v4164_v22 = vpop.f32.mrf.mxu0 }
 0x2db   : > { %v1953_v10 = vpack.c.bf16 %v1844_v26, %v1841_v17  ;;  %v1865_v23 = vadd.f32 %v4164_v22, %v5761_v9 }
 0x2dc   : > { %v1856_v24 = vpop.f32.mrf.mxu0 }
 0x2dd   : > { %4419 = vxpose.xlu0.b32.cont [12/16] %v4418_v36, 128  ;;  %4206 = vmatprep.mubr.bf16.mxu1 %v1953_v10  ;;  %v1857_v21 = vadd.f32 %v5761_v9, %v1856_v24 }
 0x2de   : > { %v4165_v47 = vpop.f32.mrf.mxu0  ;;  %4207 = vmatmul.mubr.bf16.gmra.mxu1 %v1954_v51 }
 0x2df   : > { %v1868_v43 = vadd.f32 %v4165_v47, %v5761_v9 }
 0x2e0   : > { %v1859_v5 = vpop.f32.mrf.mxu0 }
 0x2e1   : > { %v1860_v27 = vadd.f32 %v5761_v9, %v1859_v5  ;;  %4421 = vxpose.xlu0.b32.cont [13/16] %v4420_v1, 128  ;;  %v1956_v57 = vpack.c.bf16 %v1868_v43, %v1865_v23 }
 0x2e2   : > { %v4168_v28 = vpop.f32.mrf.mxu0 }
 0x2e3   : > { %v1955_v12 = vpack.c.bf16 %v1860_v27, %v1857_v21  ;;  %v1881_v50 = vadd.f32 %v4168_v28, %v5761_v9 }
 0x2e4   : > { %v1872_v37 = vpop.f32.mrf.mxu0 }
 0x2e5   : > { %4423 = vxpose.xlu0.b32.cont [14/16] %v4422_v34, 128  ;;  %4210 = vmatprep.mubr.bf16.mxu1 %v1955_v12  ;;  %v1873_v20 = vadd.f32 %v5761_v9, %v1872_v37 }
 0x2e6   : > { %v4169_v3 = vpop.f32.mrf.mxu0  ;;  %4211 = vmatmul.mubr.bf16.gmra.mxu1 %v1956_v57 }
 0x2e7   : > { %v1884_v41 = vadd.f32 %v4169_v3, %v5761_v9 }
 0x2e8   : > { %v1875_v42 = vpop.f32.mrf.mxu0 }
 0x2e9   : > { %v1876_v14 = vadd.f32 %v5761_v9, %v1875_v42  ;;  %4425 = vxpose.xlu0.b32.cont [15/16] %v4424_v39, 128  ;;  %v1958_v25 = vpack.c.bf16 %v1884_v41, %v1881_v50 }
 0x2ea   : > { %v4172_v61 = vpop.f32.mrf.mxu0 }
 0x2eb   : > { %v1957_v44 = vpack.c.bf16 %v1876_v14, %v1873_v20  ;;  %v1897_v54 = vadd.f32 %v4172_v61, %v5761_v9 }
 0x2ec   : > { %v1888_v13 = vpop.f32.mrf.mxu0 }
 0x2ed   : > { %4427 = vxpose.xlu0.b32.end [16/16] %v4426_v7, 128  ;;  %4214 = vmatprep.mubr.bf16.mxu1 %v1957_v44  ;;  %v1889_v29 = vadd.f32 %v5761_v9, %v1888_v13 }
 0x2ee   : > { %v4173_v49 = vpop.f32.mrf.mxu0  ;;  %4215 = vmatmul.mubr.bf16.gmra.mxu1 %v1958_v25 }
 0x2ef   : > { %v1900_v52 = vadd.f32 %v4173_v49, %v5761_v9 }
 0x2f0   : > { %v1891_v30 = vpop.f32.mrf.mxu0 }
 0x2f1   : > { %v1892_v31 = vadd.f32 %v5761_v9, %v1891_v30  ;;  %v1960_v8 = vpack.c.bf16 %v1900_v52, %v1897_v54 }
 0x2f2   : > { %v4176_v35 = vpop.f32.mrf.mxu0 }
 0x2f3   : > { %v1959_v58 = vpack.c.bf16 %v1892_v31, %v1889_v29  ;;  %v1913_v56 = vadd.f32 %v4176_v35, %v5761_v9 }
 0x2f4   : > { %v1904_v40 = vpop.f32.mrf.mxu0 }
 0x2f5   : > { %4218 = vmatprep.mubr.bf16.mxu1 %v1959_v58  ;;  %v1905_v62 = vadd.f32 %v5761_v9, %v1904_v40 }
 0x2f6   : > { %v4177_v45 = vpop.f32.mrf.mxu0  ;;  %4219 = vmatmul.mubr.bf16.gmra.mxu1 %v1960_v8 }
 0x2f7   : > { %v1916_v19 = vadd.f32 %v4177_v45, %v5761_v9 }
 0x2f8   : > { %v1907_v59 = vpop.f32.mrf.mxu0 }
 0x2f9   : > { %v1908_v55 = vadd.f32 %v5761_v9, %v1907_v59  ;;  %v1962_v60 = vpack.c.bf16 %v1916_v19, %v1913_v56 }
 0x2fa   : > { %v4180_v63 = vpop.f32.mrf.mxu0 }
 0x2fb   : > { %v1961_v15 = vpack.c.bf16 %v1908_v55, %v1905_v62  ;;  %v1929_v22 = vadd.f32 %v4180_v63, %v5761_v9 }
 0x2fc   : > { %v1920_v11 = vpop.f32.mrf.mxu0 }
 0x2fd   : > { %4222 = vmatprep.mubr.bf16.mxu1 %v1961_v15  ;;  %v1921_v26 = vadd.f32 %v5761_v9, %v1920_v11 }
 0x2fe   : > { %v4181_v0 = vpop.f32.mrf.mxu0  ;;  %4223 = vmatmul.mubr.bf16.gmra.mxu1 %v1962_v60 }
 0x2ff   : > { %v1932_v4 = vadd.f32 %v4181_v0, %v5761_v9 }
 0x300   : > { %v1923_v17 = vpop.f32.mrf.mxu0 }
 0x301   : > { %v1924_v18 = vadd.f32 %v5761_v9, %v1923_v17  ;;  %v1964_v36 = vpack.c.bf16 %v1932_v4, %v1929_v22 }
 0x302   : > { %v4184_v46 = vpop.f32.mrf.mxu0 }
 0x303   : > { %v1963_v10 = vpack.c.bf16 %v1924_v18, %v1921_v26  ;;  %v1945_v1 = vadd.f32 %v4184_v46, %v5761_v9 }
 0x304   : > { %v1936_v16 = vpop.f32.mrf.mxu0 }
 0x305   : > { %4226 = vmatprep.mubr.bf16.mxu1 %v1963_v10  ;;  %v1937_v47 = vadd.f32 %v5761_v9, %v1936_v16 }
 0x306   : > { %v4185_v51 = vpop.f32.mrf.mxu0  ;;  %4227 = vmatmul.mubr.bf16.gmra.mxu1 %v1964_v36 }
 0x307   : > { %v1948_v24 = vadd.f32 %v4185_v51, %v5761_v9 }
 0x308   : > { %v1939_v33 = vpop.f32.mrf.mxu0 }
 0x309   : > { %v1940_v38 = vadd.f32 %v5761_v9, %v1939_v33  ;;  %v1966_v5 = vpack.c.bf16 %v1948_v24, %v1945_v1 }
 0x30b   : > { %v1965_v43 = vpack.c.bf16 %v1940_v38, %v1937_v47 }
 0x30d   : > { %4230 = vmatprep.mubr.bf16.mxu1 %v1965_v43 }
 0x30e   : > { %4231 = vmatmul.mubr.bf16.gmra.mxu1 %v1966_v5 }
 0x32d   : > { %v4428_v48 = vpop.trf.xlu0 }
 0x32e   : > { %v4432_v21 = vunpack.i.h.bf16 %v4428_v48  ;;  %v4429_v27 = vunpack.i.l.bf16 %v4428_v48 }
 0x330   : > { %v3540_v23 = vpack.c.bf16 %v4432_v21, %v4429_v27 }
 0x331   : > { %v4433_v28 = vpop.trf.xlu0 }
 0x332   : > { %1703 = vst [vmem:[#allocation3 + $0x30] sm:$0xff] %v3540_v23  ;;  %v4437_v32 = vunpack.i.h.bf16 %v4433_v28  ;;  %v4434_v12 = vunpack.i.l.bf16 %v4433_v28 }
 0x334   : > { %v3541_v34 = vpack.c.bf16 %v4437_v32, %v4434_v12 }
 0x335   : > { %v4438_v57 = vpop.trf.xlu0 }
 0x336   : > { %1704 = vst [vmem:[#allocation3] sm:$0xff] %v3541_v34  ;;  %v4442_v37 = vunpack.i.h.bf16 %v4438_v57  ;;  %v4439_v53 = vunpack.i.l.bf16 %v4438_v57 }
 0x338   : > { %v3542_v3 = vpack.c.bf16 %v4442_v37, %v4439_v53 }
 0x339   : > { %v4443_v2 = vpop.trf.xlu0 }
 0x33a   : > { %1705 = vst [vmem:[#allocation3 + $0x58] sm:$0xff] %v3542_v3  ;;  %v4447_v9 = vunpack.i.h.bf16 %v4443_v2  ;;  %v4444_v39 = vunpack.i.l.bf16 %v4443_v2 }
 0x33c   : > { %v3543_v41 = vpack.c.bf16 %v4447_v9, %v4444_v39 }
 0x33d   : > { %v4448_v42 = vpop.trf.xlu0 }
 0x33e   : > { %1706 = vst [vmem:[#allocation3 + $0x18] sm:$0xff] %v3543_v41  ;;  %v4452_v6 = vunpack.i.h.bf16 %v4448_v42  ;;  %v4449_v20 = vunpack.i.l.bf16 %v4448_v42 }
 0x340   : > { %v3544_v14 = vpack.c.bf16 %v4452_v6, %v4449_v20 }
 0x341   : > { %v4453_v50 = vpop.trf.xlu0 }
 0x342   : > { %1707 = vst [vmem:[#allocation3 + $0x50] sm:$0xff] %v3544_v14  ;;  %v4457_v61 = vunpack.i.h.bf16 %v4453_v50  ;;  %v4454_v44 = vunpack.i.l.bf16 %v4453_v50 }
 0x344   : > { %v3545_v7 = vpack.c.bf16 %v4457_v61, %v4454_v44 }
 0x345   : > { %v4458_v25 = vpop.trf.xlu0 }
 0x346   : > { %1708 = vst [vmem:[#allocation3 + $0x68] sm:$0xff] %v3545_v7  ;;  %v4462_v13 = vunpack.i.h.bf16 %v4458_v25  ;;  %v4459_v49 = vunpack.i.l.bf16 %v4458_v25 }
 0x348   : > { %v3546_v52 = vpack.c.bf16 %v4462_v13, %v4459_v49 }
 0x349   : > { %v4463_v30 = vpop.trf.xlu0 }
 0x34a   : > { %1709 = vst [vmem:[#allocation3 + $0x8] sm:$0xff] %v3546_v52  ;;  %v4467_v29 = vunpack.i.h.bf16 %v4463_v30  ;;  %v4464_v31 = vunpack.i.l.bf16 %v4463_v30 }
 0x34c   : > { %v3547_v54 = vpack.c.bf16 %v4467_v29, %v4464_v31 }
 0x34d   : > { %v4468_v35 = vpop.trf.xlu0 }
 0x34e   : > { %1710 = vst [vmem:[#allocation3 + $0x48] sm:$0xff] %v3547_v54  ;;  %v4472_v58 = vunpack.i.h.bf16 %v4468_v35  ;;  %v4469_v8 = vunpack.i.l.bf16 %v4468_v35 }
 0x350   : > { %v3548_v40 = vpack.c.bf16 %v4472_v58, %v4469_v8 }
 0x351   : > { %v4473_v45 = vpop.trf.xlu0 }
 0x352   : > { %1711 = vst [vmem:[#allocation3 + $0x40] sm:$0xff] %v3548_v40  ;;  %v4477_v19 = vunpack.i.h.bf16 %v4473_v45  ;;  %v4474_v59 = vunpack.i.l.bf16 %v4473_v45 }
 0x354   : > { %v3549_v62 = vpack.c.bf16 %v4477_v19, %v4474_v59 }
 0x355   : > { %v4478_v55 = vpop.trf.xlu0 }
 0x356   : > { %1712 = vst [vmem:[#allocation3 + $0x20] sm:$0xff] %v3549_v62  ;;  %v4482_v56 = vunpack.i.h.bf16 %v4478_v55  ;;  %v4479_v63 = vunpack.i.l.bf16 %v4478_v55 }
 0x358   : > { %v3550_v15 = vpack.c.bf16 %v4482_v56, %v4479_v63 }
 0x359   : > { %v4483_v60 = vpop.trf.xlu0 }
 0x35a   : > { %1713 = vst [vmem:[#allocation3 + $0x10] sm:$0xff] %v3550_v15  ;;  %v4487_v11 = vunpack.i.h.bf16 %v4483_v60  ;;  %v4484_v0 = vunpack.i.l.bf16 %v4483_v60 }
 0x35c   : > { %v3551_v4 = vpack.c.bf16 %v4487_v11, %v4484_v0 }
 0x35d   : > { %v4488_v17 = vpop.trf.xlu0 }
 0x35e   : > { %1714 = vst [vmem:[#allocation3 + $0x38] sm:$0xff] %v3551_v4  ;;  %v4492_v26 = vunpack.i.h.bf16 %v4488_v17  ;;  %v4489_v18 = vunpack.i.l.bf16 %v4488_v17 }
 0x360   : > { %v3552_v22 = vpack.c.bf16 %v4492_v26, %v4489_v18 }
 0x361   : > { %v4493_v46 = vpop.trf.xlu0 }
 0x362   : > { %1715 = vst [vmem:[#allocation3 + $0x60] sm:$0xff] %v3552_v22  ;;  %v4497_v10 = vunpack.i.h.bf16 %v4493_v46  ;;  %v4494_v36 = vunpack.i.l.bf16 %v4493_v46 }
 0x364   : > { %v3553_v16 = vpack.c.bf16 %v4497_v10, %v4494_v36 }
 0x365   : > { %v4498_v51 = vpop.trf.xlu0 }
 0x366   : > { %1716 = vst [vmem:[#allocation3 + $0x70] sm:$0xff] %v3553_v16  ;;  %v4502_v24 = vunpack.i.h.bf16 %v4498_v51  ;;  %v4499_v33 = vunpack.i.l.bf16 %v4498_v51 }
 0x368   : > { %v3554_v47 = vpack.c.bf16 %v4502_v24, %v4499_v33 }
 0x369   : > { %v4503_v38 = vpop.trf.xlu0 }
 0x36a   : > { %1717 = vst [vmem:[#allocation3 + $0x78] sm:$0xff] %v3554_v47  ;;  %v4507_v1 = vunpack.i.h.bf16 %v4503_v38  ;;  %v4504_v43 = vunpack.i.l.bf16 %v4503_v38 }
 0x36c   : > { %v3555_v5 = vpack.c.bf16 %v4507_v1, %v4504_v43 }
 0x36e   : > { %1718 = vst [vmem:[#allocation3 + $0x28] sm:$0xff] %v3555_v5 }
 0x396   : > { %v4204_v48 = vpop.f32.mrf.mxu1 }
 0x398   : > { %v2065_v21 = vpop.f32.mrf.mxu1 }
 0x39a   : > { %v4205_v27 = vpop.f32.mrf.mxu1 }
 0x39b   : > { %v3676_v23 = vpack.c.bf16 %v4205_v27, %v4204_v48 }
 0x39c   : > { %v2068_v28 = vpop.f32.mrf.mxu1 }
 0x39d   : > { %3763 = vst [vmem:[#allocation4 + $0x8] sm:$0xff] %v3676_v23   ;;  %v3671_v32 = vpack.c.bf16 %v2068_v28, %v2065_v21 }
 0x39e   : > { %v4208_v12 = vpop.f32.mrf.mxu1 }
 0x39f   : > { %3672 = vst [vmem:[#allocation4] sm:$0xff] %v3671_v32  }
 0x3a0   : > { %v2081_v34 = vpop.f32.mrf.mxu1 }
 0x3a2   : > { %v4209_v57 = vpop.f32.mrf.mxu1 }
 0x3a3   : > { %v3686_v37 = vpack.c.bf16 %v4209_v57, %v4208_v12 }
 0x3a4   : > { %v2084_v53 = vpop.f32.mrf.mxu1 }
 0x3a5   : > { %3765 = vst [vmem:[#allocation4 + $0x18] sm:$0xff] %v3686_v37   ;;  %v3681_v3 = vpack.c.bf16 %v2084_v53, %v2081_v34 }
 0x3a6   : > { %v4212_v2 = vpop.f32.mrf.mxu1 }
 0x3a7   : > { %3764 = vst [vmem:[#allocation4 + $0x10] sm:$0xff] %v3681_v3  }
 0x3a8   : > { %v2097_v9 = vpop.f32.mrf.mxu1 }
 0x3aa   : > { %v4213_v39 = vpop.f32.mrf.mxu1 }
 0x3ab   : > { %v3696_v41 = vpack.c.bf16 %v4213_v39, %v4212_v2 }
 0x3ac   : > { %v2100_v42 = vpop.f32.mrf.mxu1 }
 0x3ad   : > { %3767 = vst [vmem:[#allocation4 + $0x28] sm:$0xff] %v3696_v41   ;;  %v3691_v6 = vpack.c.bf16 %v2100_v42, %v2097_v9 }
 0x3ae   : > { %v4216_v20 = vpop.f32.mrf.mxu1 }
 0x3af   : > { %3766 = vst [vmem:[#allocation4 + $0x20] sm:$0xff] %v3691_v6  }
 0x3b0   : > { %v2113_v14 = vpop.f32.mrf.mxu1 }
 0x3b2   : > { %v4217_v50 = vpop.f32.mrf.mxu1 }
 0x3b3   : > { %v3706_v61 = vpack.c.bf16 %v4217_v50, %v4216_v20 }
 0x3b4   : > { %v2116_v44 = vpop.f32.mrf.mxu1 }
 0x3b5   : > { %3769 = vst [vmem:[#allocation4 + $0x38] sm:$0xff] %v3706_v61   ;;  %v3701_v7 = vpack.c.bf16 %v2116_v44, %v2113_v14 }
 0x3b6   : > { %v4220_v25 = vpop.f32.mrf.mxu1 }
 0x3b7   : > { %3768 = vst [vmem:[#allocation4 + $0x30] sm:$0xff] %v3701_v7  }
 0x3b8   : > { %v2129_v13 = vpop.f32.mrf.mxu1 }
 0x3ba   : > { %v4221_v49 = vpop.f32.mrf.mxu1 }
 0x3bb   : > { %v3716_v52 = vpack.c.bf16 %v4221_v49, %v4220_v25 }
 0x3bc   : > { %v2132_v30 = vpop.f32.mrf.mxu1 }
 0x3bd   : > { %3771 = vst [vmem:[#allocation4 + $0x48] sm:$0xff] %v3716_v52   ;;  %v3711_v29 = vpack.c.bf16 %v2132_v30, %v2129_v13 }
 0x3be   : > { %v4224_v31 = vpop.f32.mrf.mxu1 }
 0x3bf   : > { %3770 = vst [vmem:[#allocation4 + $0x40] sm:$0xff] %v3711_v29  }
 0x3c0   : > { %v2145_v54 = vpop.f32.mrf.mxu1 }
 0x3c2   : > { %v4225_v35 = vpop.f32.mrf.mxu1 }
 0x3c3   : > { %v3726_v58 = vpack.c.bf16 %v4225_v35, %v4224_v31 }
 0x3c4   : > { %v2148_v8 = vpop.f32.mrf.mxu1 }
 0x3c5   : > { %3773 = vst [vmem:[#allocation4 + $0x58] sm:$0xff] %v3726_v58   ;;  %v3721_v40 = vpack.c.bf16 %v2148_v8, %v2145_v54 }
 0x3c6   : > { %v4228_v45 = vpop.f32.mrf.mxu1 }
 0x3c7   : > { %3772 = vst [vmem:[#allocation4 + $0x50] sm:$0xff] %v3721_v40  }
 0x3c8   : > { %v2161_v19 = vpop.f32.mrf.mxu1 }
 0x3ca   : > { %v4229_v59 = vpop.f32.mrf.mxu1 }
 0x3cb   : > { %v3736_v62 = vpack.c.bf16 %v4229_v59, %v4228_v45 }
 0x3cc   : > { %v2164_v55 = vpop.f32.mrf.mxu1 }
 0x3cd   : > { %3775 = vst [vmem:[#allocation4 + $0x68] sm:$0xff] %v3736_v62   ;;  %v3731_v56 = vpack.c.bf16 %v2164_v55, %v2161_v19 }
 0x3ce   : > { %v4232_v63 = vpop.f32.mrf.mxu1 }
 0x3cf   : > { %3774 = vst [vmem:[#allocation4 + $0x60] sm:$0xff] %v3731_v56  }
 0x3d0   : > { %v2177_v15 = vpop.f32.mrf.mxu1 }
 0x3d2   : > { %v4233_v60 = vpop.f32.mrf.mxu1 }
 0x3d3   : > { %v3746_v11 = vpack.c.bf16 %v4233_v60, %v4232_v63 }
 0x3d4   : > { %v2180_v0 = vpop.f32.mrf.mxu1 }
 0x3d5   : > { %3777 = vst [vmem:[#allocation4 + $0x78] sm:$0xff] %v3746_v11   ;;  %v3741_v4 = vpack.c.bf16 %v2180_v0, %v2177_v15 }
 0x3d7   : > { %3776 = vst [vmem:[#allocation4 + $0x70] sm:$0xff] %v3741_v4  }
 0x3d8 PF: > { %v4542_v17 = vld [vmem:[#allocation3 + $0x7c] ss:$-80 sps:$4 sm:$0xff]   ;;  %s3458_s15 = sshll.u32 %s4951_s27, 7  ;;  %v4544_v26 = vld [vmem:[#allocation3 + $0x78] ss:$-80 sps:$4 sm:$0xff]   ;;  %v4981_v18 = vmov 0  }
 0x3d9   : > { %2549 = vmatprep.mubr.bf16.mxu0 %v4981_v18  ;;  %s2353_s9 = sshra.s32 %s3458_s15, 3  ;;  %2517 = vmatprep.subr.bf16.mxu0 %v4542_v17  ;;  %v4545_v22 = vld [vmem:[#allocation3 + $0x64] ss:$16 sps:$4 sm:$0xff]   ;;  %v4547_v46 = vld [vmem:[#allocation3 + $0x60] ss:$16 sps:$4 sm:$0xff]   ;;  %v2379_v33 = vld [vmem:[#allocation3 + $0x8] sm:$0xff]  ;;  %s5959_s1 = scalar_lea.vmem %s5255_s24, %s3458_s15 [#allocation5] }
 0x3da   : > { %2518 = vmatpush1.bf16.msra.mxu0 %v4544_v26  ;;  %v4548_v10 = vld [vmem:[#allocation3 + $0x14] ss:$40 sps:$4 sm:$0xff]   ;;  %v2381_v36 = vld [vmem:[#allocation3 + $0x40] sm:$0xff]  ;;  %s3459_s16 = sshll.u32 %s2353_s9, 2  ;;  %v4550_v51 = vld [vmem:[#allocation3 + $0x10] ss:$40 sps:$4 sm:$0xff]  }
 0x3db   : > { %2519 = vmatprep.subr.bf16.mxu0 %v4545_v22  ;;  %v2382_v16 = vld [vmem:[#allocation3 + $0x20] sm:$0xff]  ;;  %s5818_s19 = scalar_lea.vmem [#allocation2], %s3459_s16  ;;  %v2380_v47 = vld [vmem:[#allocation3 + $0x48] sm:$0xff]  ;;  %v2375_v48 = vld [vmem:[#allocation3 + $0x58] sm:$0xff]  ;;  %s6141_s6 = sld [smem:[#allocation35_spill]] }
 0x3dc   : > { %v3477_v24 = vcombine.high %v2381_v36, %v2382_v16  ;;  %v3476_v38 = vcombine.low %v2381_v36, %v2382_v16  ;;  %v3475_v1 = vcombine.high %v2379_v33, %v2380_v47  ;;  %v4551_v43 = vld [vmem:[#allocation3 + $0x54] ss:$24 sps:$4 sm:$0xff]   ;;  %v3474_v5 = vcombine.low %v2379_v33, %v2380_v47  ;;  %v2376_v21 = vld [vmem:[#allocation3 + $0x18] sm:$0xff]  ;;  %v4553_v27 = vld [vmem:[#allocation3 + $0x50] ss:$24 sps:$4 sm:$0xff]   ;;  %s6142_s24 = sld [smem:[#allocation22_spill]] }
 0x3dd   : > { %v3471_v23 = vcombine.high %v2375_v48, %v2376_v21  ;;  %v4554_v28 = vld [vmem:[#allocation3 + $0x34] ss:$-48 sps:$4 sm:$0xff]   ;;  %v3470_v32 = vcombine.low %v2375_v48, %v2376_v21  ;;  %v4556_v12 = vld [vmem:[#allocation3 + $0x30] ss:$-48 sps:$4 sm:$0xff]   ;;  %v4558_v57 = vld [vmem:[%s5818_s19 + $0x8] sm:$0xff]   ;;  %s3502_s10 = sshll.u32 %s4951_s27, 4 }
 0x3de   : > { %2520 = vmatpush1.bf16.msra.mxu0 %v4547_v46  ;;  %v4557_v34 = vld [vmem:[%s5818_s19] sm:$0xff]   ;;  %v4559_v37 = vld [vmem:[%s5818_s19 + $0x10] sm:$0xff]   ;;  %v4560_v53 = vld [vmem:[%s5818_s19 + $0x18] sm:$0xff]   ;;  %s3183_s20 = sshll.u32 %s5276_s14, 4  ;;  %s6143_s15 = sld [smem:[#allocation36_spill]]  ;;  %s6021_s20 = int_to_ptr.vmem [resolvable:$true] %s3183_s20 }
 0x3df   : > { %2521 = vmatprep.subr.bf16.mxu0 %v4548_v10  ;;  %v4561_v3 = vld [vmem:[%s5818_s19 + $0x20] sm:$0xff]   ;;  %v4562_v2 = vld [vmem:[%s5818_s19 + $0x28] sm:$0xff]   ;;  %v4563_v9 = vld [vmem:[%s5818_s19 + $0x30] sm:$0xff]   ;;  %s6026_s16 = scalar_lea.sflag [#allocation7], %s516_s30 }
 0x3e0   : > { %v4564_v39 = vld [vmem:[%s5818_s19 + $0x38] sm:$0xff]   ;;  %v4567_v6 = vld [vmem:[#allocation4 + $0x70] sm:$0xff]   ;;  %v4569_v54 = vld [vmem:[#allocation4 + $0x68] sm:$0xff]   ;;  %s4835_s19 = scalar_lea.vmem %s6021_s20, 2048 }
 0x3e1   : > { %v4565_v41 = vld [vmem:[#allocation4 + $0x78] sm:$0xff]   ;;  %v4568_v20 = vld [vmem:[#allocation4 + $0x30] sm:$0xff]   ;;  %v4570_v58 = vld [vmem:[#allocation4 + $0x28] sm:$0xff]   ;;  %p4836_p1 = scmp.ne.s32.totalorder %s6021_s20, %s4835_s19 }
 0x3e2   : > { %2522 = vmatpush1.bf16.msra.mxu0 %v4550_v51  ;;  %v4566_v42 = vld [vmem:[#allocation4 + $0x38] sm:$0xff]   ;;  %3908 = vmatprep.subr.bf16.mxu1 %v4565_v41  ;;  %v4571_v45 = vld [vmem:[#allocation4 + $0x60] sm:$0xff]   ;;  %v4575_v0 = vld [vmem:[#allocation4 + $0x50] sm:$0xff]   ;;  %s3503_s11 = sshll.u32 %s6142_s24, 5 }
 0x3e3   : > { %2523 = vmatprep.subr.bf16.mxu0 %v3477_v24  ;;  %3909 = vmatpush3.bf16.msra.mxu1 %v4566_v42  ;;  %v4572_v59 = vld [vmem:[#allocation4 + $0x20] sm:$0xff]   ;;  %v4573_v56 = vld [vmem:[#allocation4 + $0x58] sm:$0xff]   ;;  %v4576_v17 = vld [vmem:[#allocation4 + $0x10] sm:$0xff]   ;;  %s3180_s4 = sadd.s32 %s3503_s11, %s3502_s10  ;;  %p4837_p11 = pnand %p4836_p1, %p5219_p7 }
 0x3e4   : > { %3910 = vmatprep.subr.bf16.mxu1 %v4567_v6  ;;  %v4574_v15 = vld [vmem:[#allocation4 + $0x18] sm:$0xff]   ;;  %v4577_v22 = vld [vmem:[#allocation4 + $0x48] sm:$0xff]   ;;  %v4579_v51 = vld [vmem:[#allocation4 + $0x40] sm:$0xff]   ;;  %s3504_s27 = sshll.u32 %s3180_s4, 7 }
 0x3e5   : > { %v4578_v10 = vld [vmem:[#allocation4 + $0x8] sm:$0xff]   ;;  %v4580_v33 = vld [vmem:[#allocation4] sm:$0xff]   ;;  %s6019_s9 = scalar_lea.hbm %s6143_s15, %s3504_s27  ;;  %p4838_p2 = pneg %p4837_p11 }
 0x3e6   : > { %2524 = vmatpush1.bf16.msra.mxu0 %v3476_v38 }
 0x3e7   : > { %2525 = vmatprep.subr.bf16.mxu0 %v3475_v1  ;;  %3911 = vmatpush3.bf16.msra.mxu1 %v4568_v20 }
 0x3e8   : > { %3912 = vmatprep.subr.bf16.mxu1 %v4569_v54 }
 0x3ea   : > { %2526 = vmatpush1.bf16.msra.mxu0 %v3474_v5 }
 0x3eb   : > { %2527 = vmatprep.subr.bf16.mxu0 %v4551_v43  ;;  %3913 = vmatpush3.bf16.msra.mxu1 %v4570_v58 }
 0x3ec   : > { %3914 = vmatprep.subr.bf16.mxu1 %v4571_v45 }
 0x3ee   : > { %2528 = vmatpush1.bf16.msra.mxu0 %v4553_v27 }
 0x3ef   : > { %2529 = vmatprep.subr.bf16.mxu0 %v3471_v23  ;;  %3915 = vmatpush3.bf16.msra.mxu1 %v4572_v59 }
 0x3f0   : > { %3916 = vmatprep.subr.bf16.mxu1 %v4573_v56 }
 0x3f2   : > { %2530 = vmatpush1.bf16.msra.mxu0 %v3470_v32 }
 0x3f3   : > { %2531 = vmatprep.subr.bf16.mxu0 %v4554_v28  ;;  %3917 = vmatpush3.bf16.msra.mxu1 %v4574_v15 }
 0x3f4   : > { %3918 = vmatprep.subr.bf16.mxu1 %v4575_v0 }
 0x3f6   : > { %2532 = vmatpush1.bf16.msra.mxu0 %v4556_v12 }
 0x3f7   : > { %3919 = vmatpush3.bf16.msra.mxu1 %v4576_v17 }
 0x3f8   : > { %3920 = vmatprep.subr.bf16.mxu1 %v4577_v22 }
 0x3f9   : > { %2550 = vmatmul.mubr.bf16.vlgmr.msra.gmra.mxu0 %v4557_v34 }
 0x3fa   : > { %2559 = vmatprep.mubr.bf16.mxu0 %v4981_v18 }
 0x3fb   : > { %3921 = vmatpush3.bf16.msra.mxu1 %v4578_v10 }
 0x3fc   : > { %3922 = vmatprep.subr.bf16.mxu1 %v4579_v51 }
 0x3ff   : > { %3923 = vmatpush3.bf16.msra.mxu1 %v4580_v33 }
 0x401   : > { %2560 = vmatmul.mubr.bf16.gmra.mxu0 %v4558_v57 }
 0x402   : > { %2569 = vmatprep.mubr.bf16.mxu0 %v4981_v18 }
 0x409   : > { %2570 = vmatmul.mubr.bf16.gmra.mxu0 %v4559_v37 }
 0x40a   : > { %2579 = vmatprep.mubr.bf16.mxu0 %v4981_v18 }
 0x411   : > { %2580 = vmatmul.mubr.bf16.gmra.mxu0 %v4560_v53 }
 0x412   : > { %2589 = vmatprep.mubr.bf16.mxu0 %v4981_v18 }
 0x419   : > { %2590 = vmatmul.mubr.bf16.gmra.mxu0 %v4561_v3 }
 0x41a   : > { %2599 = vmatprep.mubr.bf16.mxu0 %v4981_v18 }
 0x421   : > { %2600 = vmatmul.mubr.bf16.gmra.mxu0 %v4562_v2 }
 0x422   : > { %2609 = vmatprep.mubr.bf16.mxu0 %v4981_v18 }
 0x429   : > { %2610 = vmatmul.mubr.bf16.gmra.mxu0 %v4563_v9 }
 0x42a   : > { %2619 = vmatprep.mubr.bf16.mxu0 %v4981_v18 }
 0x431   : > { %2620 = vmatmul.mubr.bf16.gmra.mxu0 %v4564_v39 }
 0x4b9   : > { %v5828_v14 = vpop.f32.mrf.mxu0 }
 0x4bb   : > { %v5830_v50 = vpop.f32.mrf.mxu0 }
 0x4bc   : > { %v2630_v61 = vmax.f32 %v5828_v14, %v5830_v50 }
 0x4bd   : > { %v5834_v44 = vpop.f32.mrf.mxu0 }
 0x4be   : > { %2631 = vmax.xlane.f32.xlu0 %v2630_v61 }
 0x4bf   : > { %v5836_v7 = vpop.f32.mrf.mxu0 }
 0x4c0   : > { %v2633_v25 = vmax.f32 %v5834_v44, %v5836_v7 }
 0x4c1   : > { %v5840_v13 = vpop.f32.mrf.mxu0 }
 0x4c2   : > { %2634 = vmax.xlane.f32.xlu0 %v2633_v25 }
 0x4c3   : > { %v5842_v49 = vpop.f32.mrf.mxu0 }
 0x4c4   : > { %v2636_v52 = vmax.f32 %v5840_v13, %v5842_v49 }
 0x4c5   : > { %v5846_v30 = vpop.f32.mrf.mxu0 }
 0x4c6   : > { %2637 = vmax.xlane.f32.xlu1 %v2636_v52 }
 0x4c7   : > { %v5848_v29 = vpop.f32.mrf.mxu0 }
 0x4c8   : > { %v2639_v31 = vmax.f32 %v5846_v30, %v5848_v29 }
 0x4c9   : > { %v5852_v35 = vpop.f32.mrf.mxu0 }
 0x4ca   : > { %2640 = vmax.xlane.f32.xlu1 %v2639_v31 }
 0x4cb   : > { %v5854_v8 = vpop.f32.mrf.mxu0 }
 0x4cc   : > { %v2642_v40 = vmax.f32 %v5852_v35, %v5854_v8 }
 0x4cd   : > { %v5858_v19 = vpop.f32.mrf.mxu0 }
 0x4ce   : > { %2643 = vmax.xlane.f32.xlu0 %v2642_v40 }
 0x4cf   : > { %v5860_v62 = vpop.f32.mrf.mxu0 }
 0x4d0   : > { %v2645_v55 = vmax.f32 %v5858_v19, %v5860_v62 }
 0x4d1   : > { %v5864_v63 = vpop.f32.mrf.mxu0 }
 0x4d2   : > { %2646 = vmax.xlane.f32.xlu1 %v2645_v55 }
 0x4d3   : > { %v5866_v60 = vpop.f32.mrf.mxu0 }
 0x4d4   : > { %v2648_v11 = vmax.f32 %v5864_v63, %v5866_v60 }
 0x4d5   : > { %v5870_v4 = vpop.f32.mrf.mxu0 }
 0x4d6   : > { %2649 = vmax.xlane.f32.xlu0 %v2648_v11 }
 0x4d7   : > { %v5872_v26 = vpop.f32.mrf.mxu0 }
 0x4d8   : > { %v2651_v18 = vmax.f32 %v5870_v4, %v5872_v26 }
 0x4d9   : > { %v5876_v46 = vpop.f32.mrf.mxu0 }
 0x4da   : > { %2652 = vmax.xlane.f32.xlu1 %v2651_v18 }
 0x4db   : > { %v5878_v36 = vpop.f32.mrf.mxu0 }
 0x4dc   : > { %v2654_v16 = vmax.f32 %v5876_v46, %v5878_v36 }
 0x4dd   : > { %v5882_v24 = vpop.f32.mrf.mxu0 }
 0x4de   : > { %2655 = vmax.xlane.f32.xlu0 %v2654_v16 }
 0x4df   : > { %v5884_v47 = vpop.f32.mrf.mxu0 }
 0x4e0   : > { %v2657_v38 = vmax.f32 %v5882_v24, %v5884_v47 }
 0x4e1   : > { %v5888_v1 = vpop.f32.mrf.mxu0 }
 0x4e2   : > { %2658 = vmax.xlane.f32.xlu1 %v2657_v38 }
 0x4e3   : > { %v5890_v43 = vpop.f32.mrf.mxu0 }
 0x4e4   : > { %v2660_v5 = vmax.f32 %v5888_v1, %v5890_v43 }
 0x4e5   : > { %v5894_v48 = vpop.f32.mrf.mxu0 }
 0x4e6   : > { %2661 = vmax.xlane.f32.xlu0 %v2660_v5 }
 0x4e7   : > { %v5896_v21 = vpop.f32.mrf.mxu0 }
 0x4e8   : > { %v2663_v27 = vmax.f32 %v5894_v48, %v5896_v21 }
 0x4e9   : > { %v5900_v23 = vpop.f32.mrf.mxu0 }
 0x4ea   : > { %2664 = vmax.xlane.f32.xlu1 %v2663_v27 }
 0x4eb   : > { %v5902_v28 = vpop.f32.mrf.mxu0 }
 0x4ec   : > { %v2666_v32 = vmax.f32 %v5900_v23, %v5902_v28 }
 0x4ed   : > { %v5906_v12 = vpop.f32.mrf.mxu0 }
 0x4ee   : > { %2667 = vmax.xlane.f32.xlu0 %v2666_v32 }
 0x4ef   : > { %v5908_v34 = vpop.f32.mrf.mxu0 }
 0x4f0   : > { %v2669_v57 = vmax.f32 %v5906_v12, %v5908_v34 }
 0x4f1   : > { %v5912_v37 = vpop.f32.mrf.mxu0 }
 0x4f2   : > { %2670 = vmax.xlane.f32.xlu1 %v2669_v57 }
 0x4f3   : > { %v5914_v53 = vpop.f32.mrf.mxu0 }
 0x4f4   : > { %v2672_v3 = vmax.f32 %v5912_v37, %v5914_v53 }
 0x4f5   : > { %v5918_v2 = vpop.f32.mrf.mxu0 }
 0x4f6   : > { %2673 = vmax.xlane.f32.xlu0 %v2672_v3 }
 0x4f7   : > { %v5920_v9 = vpop.f32.mrf.mxu0 }
 0x4f8   : > { %v2675_v39 = vmax.f32 %v5918_v2, %v5920_v9 }
 0x4fa   : > { %2676 = vmax.xlane.f32.xlu1 %v2675_v39 }
 0x547   : > { %v2632_v41 = vpop.xlane.xlu0 %2631 }
 0x548   : > { %v2678_v42 = vsub.f32 %v5828_v14, %v2632_v41  ;;  %v2679_v6 = vsub.f32 %v5830_v50, %v2632_v41 }
 0x54a   : > { %v2710_v20 = vmul.f32 1.442695, %v2678_v42  ;;  %v2712_v61 = vmul.f32 1.442695, %v2679_v6 }
 0x54b   : > { %v2635_v25 = vpop.xlane.xlu0 %2634 }
 0x54c   : > { %4581 = vpow2.f32 %v2710_v20  ;;  %v2680_v52 = vsub.f32 %v5834_v44, %v2635_v25  ;;  %v2681_v31 = vsub.f32 %v5836_v7, %v2635_v25 }
 0x54d   : > { %4583 = vpow2.f32 %v2712_v61 }
 0x54e   : > { %v2714_v54 = vmul.f32 1.442695, %v2680_v52  ;;  %v2716_v58 = vmul.f32 1.442695, %v2681_v31 }
 0x54f   : > { %v2638_v40 = vpop.xlane.xlu1 %2637 }
 0x550   : > { %4585 = vpow2.f32 %v2714_v54  ;;  %v2682_v45 = vsub.f32 %v5840_v13, %v2638_v40  ;;  %v2683_v59 = vsub.f32 %v5842_v49, %v2638_v40 }
 0x551   : > { %4587 = vpow2.f32 %v2716_v58 }
 0x552   : > { %v2718_v14 = vmul.f32 1.442695, %v2682_v45  ;;  %v2720_v50 = vmul.f32 1.442695, %v2683_v59 }
 0x553   : > { %v2641_v55 = vpop.xlane.xlu1 %2640 }
 0x554   : > { %4589 = vpow2.f32 %v2718_v14  ;;  %v2684_v56 = vsub.f32 %v5846_v30, %v2641_v55  ;;  %v2685_v44 = vsub.f32 %v5848_v29, %v2641_v55 }
 0x555   : > { %4591 = vpow2.f32 %v2720_v50 }
 0x556   : > { %v2722_v7 = vmul.f32 1.442695, %v2684_v56  ;;  %v2724_v15 = vmul.f32 1.442695, %v2685_v44 }
 0x557   : > { %v2644_v11 = vpop.xlane.xlu0 %2643 }
 0x558   : > { %4593 = vpow2.f32 %v2722_v7  ;;  %v2686_v0 = vsub.f32 %v5852_v35, %v2644_v11  ;;  %v2687_v13 = vsub.f32 %v5854_v8, %v2644_v11 }
 0x559   : > { %v4582_v17 = vpop.eup %4581  ;;  %4595 = vpow2.f32 %v2724_v15 }
 0x55a   : > { %v4584_v49 = vpop.eup %4583  ;;  %v2726_v18 = vmul.f32 1.442695, %v2686_v0  ;;  %v2728_v22 = vmul.f32 1.442695, %v2687_v13 }
 0x55b   : > { %v2647_v10 = vpop.xlane.xlu1 %2646  ;;  %v2774_v16 = vadd.f32 %v4584_v49, %v4582_v17 }
 0x55c   : > { %4597 = vpow2.f32 %v2726_v18  ;;  %v2688_v30 = vsub.f32 %v5858_v19, %v2647_v10  ;;  %v2689_v29 = vsub.f32 %v5860_v62, %v2647_v10 }
 0x55d   : > { %v4586_v51 = vpop.eup %4585  ;;  %4599 = vpow2.f32 %v2728_v22  ;;  %2775 = vadd.xlane.f32.xlu0 %v2774_v16 }
 0x55e   : > { %v4588_v33 = vpop.eup %4587  ;;  %v2730_v38 = vmul.f32 1.442695, %v2688_v30  ;;  %v2732_v35 = vmul.f32 1.442695, %v2689_v29  ;;  %v2822_v5 = vpack.c.bf16 %v4586_v51, %v4582_v17 }
 0x55f   : > { %v2650_v8 = vpop.xlane.xlu0 %2649  ;;  %v2823_v27 = vpack.c.bf16 %v4588_v33, %v4584_v49  ;;  %v2777_v32 = vadd.f32 %v4588_v33, %v4586_v51 }
 0x560   : > { %4601 = vpow2.f32 %v2730_v38  ;;  %v2690_v57 = vsub.f32 %v5864_v63, %v2650_v8  ;;  %v2691_v3 = vsub.f32 %v5866_v60, %v2650_v8 }
 0x561   : > { %v4590_v39 = vpop.eup %4589  ;;  %4603 = vpow2.f32 %v2732_v35  ;;  %2998 = vmatprep.mubr.bf16.mxu1 %v2823_v27  ;;  %2778 = vadd.xlane.f32.xlu1 %v2777_v32 }
 0x562   : > { %v4592_v19 = vpop.eup %4591  ;;  %v2734_v62 = vmul.f32 1.442695, %v2690_v57  ;;  %v2736_v41 = vmul.f32 1.442695, %v2691_v3  ;;  %2999 = vmatmul.mubr.bf16.vlgmr.msra.gmra.mxu1 %v2822_v5 }
 0x563   : > { %v2653_v42 = vpop.xlane.xlu1 %2652  ;;  %v2780_v6 = vadd.f32 %v4592_v19, %v4590_v39 }
 0x564   : > { %4605 = vpow2.f32 %v2734_v62  ;;  %v2692_v20 = vsub.f32 %v5870_v4, %v2653_v42  ;;  %v2693_v61 = vsub.f32 %v5872_v26, %v2653_v42 }
 0x565   : > { %v4594_v25 = vpop.eup %4593  ;;  %4607 = vpow2.f32 %v2736_v41  ;;  %2781 = vadd.xlane.f32.xlu0 %v2780_v6 }
 0x566   : > { %v4596_v63 = vpop.eup %4595  ;;  %v2738_v60 = vmul.f32 1.442695, %v2692_v20  ;;  %v2740_v52 = vmul.f32 1.442695, %v2693_v61  ;;  %v2824_v31 = vpack.c.bf16 %v4594_v25, %v4590_v39 }
 0x567   : > { %v2656_v54 = vpop.xlane.xlu0 %2655  ;;  %v2825_v58 = vpack.c.bf16 %v4596_v63, %v4592_v19  ;;  %v2783_v40 = vadd.f32 %v4596_v63, %v4594_v25 }
 0x568   : > { %4609 = vpow2.f32 %v2738_v60  ;;  %v2694_v45 = vsub.f32 %v5876_v46, %v2656_v54  ;;  %v2695_v59 = vsub.f32 %v5878_v36, %v2656_v54 }
 0x569   : > { %v4598_v14 = vpop.eup %4597  ;;  %4611 = vpow2.f32 %v2740_v52  ;;  %3006 = vmatprep.mubr.bf16.mxu1 %v2825_v58  ;;  %2784 = vadd.xlane.f32.xlu1 %v2783_v40 }
 0x56a   : > { %v4600_v4 = vpop.eup %4599  ;;  %v2742_v26 = vmul.f32 1.442695, %v2694_v45  ;;  %v2744_v50 = vmul.f32 1.442695, %v2695_v59  ;;  %3007 = vmatmul.mubr.bf16.gmra.mxu1 %v2824_v31 }
 0x56b   : > { %v2659_v55 = vpop.xlane.xlu1 %2658  ;;  %v2786_v56 = vadd.f32 %v4600_v4, %v4598_v14 }
 0x56c   : > { %4613 = vpow2.f32 %v2742_v26  ;;  %v2696_v44 = vsub.f32 %v5882_v24, %v2659_v55  ;;  %v2697_v7 = vsub.f32 %v5884_v47, %v2659_v55 }
 0x56d   : > { %v4602_v15 = vpop.eup %4601  ;;  %4615 = vpow2.f32 %v2744_v50  ;;  %2787 = vadd.xlane.f32.xlu0 %v2786_v56 }
 0x56e   : > { %v4604_v46 = vpop.eup %4603  ;;  %v2746_v36 = vmul.f32 1.442695, %v2696_v44  ;;  %v2748_v11 = vmul.f32 1.442695, %v2697_v7  ;;  %v2826_v0 = vpack.c.bf16 %v4602_v15, %v4598_v14 }
 0x56f   : > { %v2662_v13 = vpop.xlane.xlu0 %2661  ;;  %v2827_v17 = vpack.c.bf16 %v4604_v46, %v4600_v4  ;;  %v2789_v49 = vadd.f32 %v4604_v46, %v4602_v15 }
 0x570   : > { %4617 = vpow2.f32 %v2746_v36  ;;  %v2698_v18 = vsub.f32 %v5888_v1, %v2662_v13  ;;  %v2699_v22 = vsub.f32 %v5890_v43, %v2662_v13 }
 0x571   : > { %v4606_v10 = vpop.eup %4605  ;;  %4619 = vpow2.f32 %v2748_v11  ;;  %3014 = vmatprep.mubr.bf16.mxu1 %v2827_v17  ;;  %2790 = vadd.xlane.f32.xlu1 %v2789_v49 }
 0x572   : > { %v4608_v24 = vpop.eup %4607  ;;  %v2750_v47 = vmul.f32 1.442695, %v2698_v18  ;;  %v2752_v16 = vmul.f32 1.442695, %v2699_v22  ;;  %3015 = vmatmul.mubr.bf16.gmra.mxu1 %v2826_v0 }
 0x573   : > { %v2665_v30 = vpop.xlane.xlu1 %2664  ;;  %v2792_v29 = vadd.f32 %v4608_v24, %v4606_v10 }
 0x574   : > { %4621 = vpow2.f32 %v2750_v47  ;;  %v2700_v51 = vsub.f32 %v5894_v48, %v2665_v30  ;;  %v2701_v33 = vsub.f32 %v5896_v21, %v2665_v30 }
 0x575   : > { %v4610_v38 = vpop.eup %4609  ;;  %4623 = vpow2.f32 %v2752_v16  ;;  %2793 = vadd.xlane.f32.xlu0 %v2792_v29 }
 0x576   : > { %v4612_v1 = vpop.eup %4611  ;;  %v2754_v43 = vmul.f32 1.442695, %v2700_v51  ;;  %v2756_v35 = vmul.f32 1.442695, %v2701_v33  ;;  %v2828_v5 = vpack.c.bf16 %v4610_v38, %v4606_v10 }
 0x577   : > { %v2668_v8 = vpop.xlane.xlu0 %2667  ;;  %v2829_v27 = vpack.c.bf16 %v4612_v1, %v4608_v24  ;;  %v2795_v32 = vadd.f32 %v4612_v1, %v4610_v38 }
 0x578   : > { %4625 = vpow2.f32 %v2754_v43  ;;  %v2702_v57 = vsub.f32 %v5900_v23, %v2668_v8  ;;  %v2703_v3 = vsub.f32 %v5902_v28, %v2668_v8 }
 0x579   : > { %v4614_v39 = vpop.eup %4613  ;;  %4627 = vpow2.f32 %v2756_v35  ;;  %3022 = vmatprep.mubr.bf16.mxu1 %v2829_v27  ;;  %2796 = vadd.xlane.f32.xlu1 %v2795_v32  ;;  %v3119_v32 = vld [vmem:[%s5959_s1] sm:$0xff] }
 0x57a   : > { %v4616_v48 = vpop.eup %4615  ;;  %v2758_v21 = vmul.f32 1.442695, %v2702_v57  ;;  %v2760_v19 = vmul.f32 1.442695, %v2703_v3  ;;  %3023 = vmatmul.mubr.bf16.gmra.mxu1 %v2828_v5  ;;  %v5964_v5 = vld [vmem:[%s6141_s6] ss:$0 sm:$0xff] }
 0x57b   : > { %v2671_v62 = vpop.xlane.xlu1 %2670  ;;  %v2798_v41 = vadd.f32 %v4616_v48, %v4614_v39 }
 0x57c   : > { %4629 = vpow2.f32 %v2758_v21  ;;  %v2704_v42 = vsub.f32 %v5906_v12, %v2671_v62  ;;  %v2705_v6 = vsub.f32 %v5908_v34, %v2671_v62 }
 0x57d   : > { %v4618_v20 = vpop.eup %4617  ;;  %4631 = vpow2.f32 %v2760_v19  ;;  %2799 = vadd.xlane.f32.xlu0 %v2798_v41 }
 0x57e   : > { %v4620_v23 = vpop.eup %4619  ;;  %v2762_v28 = vmul.f32 1.442695, %v2704_v42  ;;  %v2764_v61 = vmul.f32 1.442695, %v2705_v6  ;;  %v2830_v25 = vpack.c.bf16 %v4618_v20, %v4614_v39  ;;  %v3120_v42 = vld [vmem:[%s5959_s1 + $0x8] sm:$0xff] }
 0x57f   : > { %v2674_v63 = vpop.xlane.xlu0 %2673  ;;  %v2831_v60 = vpack.c.bf16 %v4620_v23, %v4616_v48  ;;  %v2801_v52 = vadd.f32 %v4620_v23, %v4618_v20 }
 0x580   : > { %4633 = vpow2.f32 %v2762_v28  ;;  %v2706_v31 = vsub.f32 %v5912_v37, %v2674_v63  ;;  %v2707_v54 = vsub.f32 %v5914_v53, %v2674_v63 }
 0x581   : > { %v4622_v58 = vpop.eup %4621  ;;  %4635 = vpow2.f32 %v2764_v61  ;;  %3030 = vmatprep.mubr.bf16.mxu1 %v2831_v60  ;;  %2802 = vadd.xlane.f32.xlu1 %v2801_v52  ;;  %v3121_v52 = vld [vmem:[%s5959_s1 + $0x10] sm:$0xff] }
 0x582   : > { %v4624_v12 = vpop.eup %4623  ;;  %v2766_v34 = vmul.f32 1.442695, %v2706_v31  ;;  %v2768_v40 = vmul.f32 1.442695, %v2707_v54  ;;  %3031 = vmatmul.mubr.bf16.gmra.mxu1 %v2830_v25 }
 0x583   : > { %v2677_v45 = vpop.xlane.xlu1 %2676  ;;  %v2804_v59 = vadd.f32 %v4624_v12, %v4622_v58 }
 0x584   : > { %4637 = vpow2.f32 %v2766_v34  ;;  %v2708_v14 = vsub.f32 %v5918_v2, %v2677_v45  ;;  %v2709_v4 = vsub.f32 %v5920_v9, %v2677_v45 }
 0x585   : > { %v4626_v26 = vpop.eup %4625  ;;  %4639 = vpow2.f32 %v2768_v40  ;;  %2805 = vadd.xlane.f32.xlu0 %v2804_v59 }
 0x586   : > { %v4628_v37 = vpop.eup %4627  ;;  %v2770_v53 = vmul.f32 1.442695, %v2708_v14  ;;  %v2772_v50 = vmul.f32 1.442695, %v2709_v4  ;;  %v2832_v55 = vpack.c.bf16 %v4626_v26, %v4622_v58  ;;  %v3122_v14 = vld [vmem:[%s5959_s1 + $0x18] sm:$0xff] }
 0x587   : > { %v2833_v56 = vpack.c.bf16 %v4628_v37, %v4624_v12  ;;  %v2807_v44 = vadd.f32 %v4628_v37, %v4626_v26 }
 0x588   : > { %4641 = vpow2.f32 %v2770_v53 }
 0x589   : > { %v4630_v7 = vpop.eup %4629  ;;  %4643 = vpow2.f32 %v2772_v50  ;;  %3038 = vmatprep.mubr.bf16.mxu1 %v2833_v56  ;;  %2808 = vadd.xlane.f32.xlu1 %v2807_v44 }
 0x58a   : > { %v4632_v15 = vpop.eup %4631  ;;  %3039 = vmatmul.mubr.bf16.gmra.mxu1 %v2832_v55 }
 0x58b   : > { %v2810_v46 = vadd.f32 %v4632_v15, %v4630_v7 }
 0x58d   : > { %v4634_v2 = vpop.eup %4633  ;;  %2811 = vadd.xlane.f32.xlu0 %v2810_v46 }
 0x58e   : > { %v4636_v9 = vpop.eup %4635  ;;  %v2834_v36 = vpack.c.bf16 %v4634_v2, %v4630_v7  ;;  %v3123_v7 = vld [vmem:[%s5959_s1 + $0x20] sm:$0xff] }
 0x58f   : > { %v2835_v11 = vpack.c.bf16 %v4636_v9, %v4632_v15  ;;  %v2813_v0 = vadd.f32 %v4636_v9, %v4634_v2 }
 0x591   : > { %v4638_v13 = vpop.eup %4637  ;;  %3046 = vmatprep.mubr.bf16.mxu1 %v2835_v11  ;;  %2814 = vadd.xlane.f32.xlu1 %v2813_v0 }
 0x592   : > { %v4640_v17 = vpop.eup %4639  ;;  %3047 = vmatmul.mubr.bf16.gmra.mxu1 %v2834_v36 }
 0x593   : > { %v2816_v49 = vadd.f32 %v4640_v17, %v4638_v13 }
 0x595   : > { %v4642_v18 = vpop.eup %4641  ;;  %2817 = vadd.xlane.f32.xlu0 %v2816_v49 }
 0x596   : > { %v4644_v22 = vpop.eup %4643  ;;  %v2836_v10 = vpack.c.bf16 %v4642_v18, %v4638_v13 }
 0x597   : > { %v2837_v24 = vpack.c.bf16 %v4644_v22, %v4640_v17  ;;  %v2819_v47 = vadd.f32 %v4644_v22, %v4642_v18  ;;  %v3124_v17 = vld [vmem:[%s5959_s1 + $0x28] sm:$0xff] }
 0x599   : > { %3054 = vmatprep.mubr.bf16.mxu1 %v2837_v24  ;;  %2820 = vadd.xlane.f32.xlu1 %v2819_v47 }
 0x59a   : > { %3055 = vmatmul.mubr.bf16.gmra.mxu1 %v2836_v10 }
 0x5e6   : > { %v2776_v16 = vpop.xlane.xlu0 %2775 }
 0x5e7   : > { %4645 = vrcp.f32 %v2776_v16 }
 0x5ea   : > { %v2779_v30 = vpop.xlane.xlu1 %2778 }
 0x5eb   : > { %4647 = vrcp.f32 %v2779_v30 }
 0x5ee   : > { %v2782_v29 = vpop.xlane.xlu0 %2781 }
 0x5ef   : > { %4649 = vrcp.f32 %v2782_v29  ;;  %v3125_v29 = vld [vmem:[%s5959_s1 + $0x30] sm:$0xff] }
 0x5f2   : > { %v2785_v51 = vpop.xlane.xlu1 %2784 }
 0x5f3   : > { %4651 = vrcp.f32 %v2785_v51 }
 0x5f4   : > { %v4646_v43 = vpop.eup %4645 }
 0x5f6   : > { %v2788_v35 = vpop.xlane.xlu0 %2787 }
 0x5f7   : > { %4653 = vrcp.f32 %v2788_v35 }
 0x5f8   : > { %v4648_v48 = vpop.eup %4647 }
 0x5fa   : > { %v2791_v21 = vpop.xlane.xlu1 %2790 }
 0x5fb   : > { %4655 = vrcp.f32 %v2791_v21 }
 0x5fc   : > { %v4650_v28 = vpop.eup %4649 }
 0x5fe   : > { %v2794_v61 = vpop.xlane.xlu0 %2793 }
 0x5ff   : > { %4657 = vrcp.f32 %v2794_v61 }
 0x600   : > { %v4652_v12 = vpop.eup %4651 }
 0x602   : > { %v2797_v34 = vpop.xlane.xlu1 %2796 }
 0x603   : > { %4659 = vrcp.f32 %v2797_v34 }
 0x604   : > { %v4654_v53 = vpop.eup %4653 }
 0x606   : > { %v2800_v50 = vpop.xlane.xlu0 %2799 }
 0x607   : > { %4661 = vrcp.f32 %v2800_v50 }
 0x608   : > { %v4656_v9 = vpop.eup %4655 }
 0x60a   : > { %v2803_v36 = vpop.xlane.xlu1 %2802 }
 0x60b   : > { %4663 = vrcp.f32 %v2803_v36 }
 0x60c   : > { %v4658_v10 = vpop.eup %4657 }
 0x60e   : > { %v2806_v24 = vpop.xlane.xlu0 %2805 }
 0x60f   : > { %4665 = vrcp.f32 %v2806_v24 }
 0x616   : > { %v2812_v21 = vpop.xlane.xlu0 %2811 }
 0x61e   : > { %v2818_v34 = vpop.xlane.xlu0 %2817 }
 0x622   : > { %v3924_v33 = vpop.f32.mrf.mxu1 }
 0x624   : > { %v3925_v38 = vpop.f32.mrf.mxu1 }
 0x625   : > { %v3926_v1 = vadd.f32 %v3925_v38, %v3924_v33 }
 0x626   : > { %v3927_v8 = vpop.f32.mrf.mxu1 }
 0x627   : > { %v3079_v27 = vmul.f32 %v4646_v43, %v3926_v1  ;;  %v4660_v1 = vpop.eup %4659  ;;  %v2809_v43 = vpop.xlane.xlu1 %2808 }
 0x628   : > { %v3928_v57 = vpop.f32.mrf.mxu1  ;;  %4667 = vrcp.f32 %v2809_v43 }
 0x629   : > { %v3102_v3 = vadd.f32 %v5964_v5, %v3079_v27  ;;  %v3929_v39 = vadd.f32 %v3928_v57, %v3927_v8  ;;  %4669 = vrcp.f32 %v2812_v21 }
 0x62a   : > { %v3930_v19 = vpop.f32.mrf.mxu1 }
 0x62b   : > { %v3135_v62 = vadd.f32 %v3119_v32, %v3102_v3  ;;  %v3080_v41 = vmul.f32 %v4648_v48, %v3929_v39  ;;  %v3126_v32 = vld [vmem:[%s5959_s1 + $0x38] sm:$0xff]  ;;  %v4662_v48 = vpop.eup %4661  ;;  %v2815_v61 = vpop.xlane.xlu1 %2814 }
 0x62c   : > { %v3931_v6 = vpop.f32.mrf.mxu1  ;;  %4671 = vrcp.f32 %v2815_v61 }
 0x62d   : > { %3151 = vst [vmem:[%s5276_s14] sm:$0xff] %v3135_v62  ;;  %v3103_v20 = vadd.f32 %v5964_v5, %v3080_v41  ;;  %v3932_v23 = vadd.f32 %v3931_v6, %v3930_v19  ;;  %4673 = vrcp.f32 %v2818_v34 }
 0x62e   : > { %v3933_v25 = vpop.f32.mrf.mxu1 }
 0x62f   : > { %v3136_v63 = vadd.f32 %v3120_v42, %v3103_v20  ;;  %v3081_v60 = vmul.f32 %v4650_v28, %v3932_v23  ;;  %v3127_v42 = vld [vmem:[%s5959_s1 + $0x40] sm:$0xff]  ;;  %v4664_v28 = vpop.eup %4663  ;;  %v2821_v50 = vpop.xlane.xlu1 %2820 }
 0x630   : > { %v3934_v31 = vpop.f32.mrf.mxu1  ;;  %4675 = vrcp.f32 %v2821_v50 }
 0x631   : > { %3152 = vst [vmem:[%s5276_s14 + $0x8] sm:$0xff] %v3136_v63  ;;  %v3104_v54 = vadd.f32 %v5964_v5, %v3081_v60  ;;  %v3935_v58 = vadd.f32 %v3934_v31, %v3933_v25 }
 0x632   : > { %v3936_v40 = vpop.f32.mrf.mxu1 }
 0x633   : > { %v3137_v45 = vadd.f32 %v3121_v52, %v3104_v54  ;;  %v3082_v59 = vmul.f32 %v4652_v12, %v3935_v58  ;;  %v3128_v52 = vld [vmem:[%s5959_s1 + $0x48] sm:$0xff]  ;;  %v4666_v12 = vpop.eup %4665 }
 0x634   : > { %v3937_v4 = vpop.f32.mrf.mxu1 }
 0x635   : > { %3153 = vst [vmem:[%s5276_s14 + $0x10] sm:$0xff] %v3137_v45  ;;  %v3105_v26 = vadd.f32 %v5964_v5, %v3082_v59  ;;  %v3938_v37 = vadd.f32 %v3937_v4, %v3936_v40 }
 0x636   : > { %v3939_v55 = vpop.f32.mrf.mxu1 }
 0x637   : > { %v3138_v56 = vadd.f32 %v3122_v14, %v3105_v26  ;;  %v3083_v44 = vmul.f32 %v4654_v53, %v3938_v37  ;;  %v3129_v14 = vld [vmem:[%s5959_s1 + $0x50] sm:$0xff]  ;;  %v4668_v53 = vpop.eup %4667 }
 0x638   : > { %v3940_v15 = vpop.f32.mrf.mxu1 }
 0x639   : > { %3154 = vst [vmem:[%s5276_s14 + $0x18] sm:$0xff] %v3138_v56  ;;  %v3106_v46 = vadd.f32 %v5964_v5, %v3083_v44  ;;  %v3941_v2 = vadd.f32 %v3940_v15, %v3939_v55 }
 0x63a   : > { %v3942_v11 = vpop.f32.mrf.mxu1 }
 0x63b   : > { %v3139_v0 = vadd.f32 %v3123_v7, %v3106_v46  ;;  %v3084_v13 = vmul.f32 %v4656_v9, %v3941_v2  ;;  %v3130_v7 = vld [vmem:[%s5959_s1 + $0x58] sm:$0xff]  ;;  %v4670_v9 = vpop.eup %4669 }
 0x63c   : > { %v3943_v49 = vpop.f32.mrf.mxu1 }
 0x63d   : > { %3155 = vst [vmem:[%s5276_s14 + $0x20] sm:$0xff] %v3139_v0  ;;  %v3107_v18 = vadd.f32 %v5964_v5, %v3084_v13  ;;  %v3944_v22 = vadd.f32 %v3943_v49, %v3942_v11  ;;  %v3131_v13 = vld [vmem:[%s5959_s1 + $0x60] sm:$0xff] }
 0x63e   : > { %v3945_v47 = vpop.f32.mrf.mxu1 }
 0x63f   : > { %v3140_v16 = vadd.f32 %v3124_v17, %v3107_v18  ;;  %v3085_v30 = vmul.f32 %v4658_v10, %v3944_v22  ;;  %v4672_v22 = vpop.eup %4671 }
 0x640   : > { %v3946_v51 = vpop.f32.mrf.mxu1 }
 0x641   : > { %3156 = vst [vmem:[%s5276_s14 + $0x28] sm:$0xff] %v3140_v16  ;;  %v3108_v33 = vadd.f32 %v5964_v5, %v3085_v30  ;;  %v3947_v38 = vadd.f32 %v3946_v51, %v3945_v47  ;;  %v3132_v16 = vld [vmem:[%s5959_s1 + $0x68] sm:$0xff] }
 0x642   : > { %v3948_v35 = vpop.f32.mrf.mxu1 }
 0x643   : > { %v3141_v8 = vadd.f32 %v3125_v29, %v3108_v33  ;;  %v3086_v27 = vmul.f32 %v4660_v1, %v3947_v38  ;;  %v4674_v33 = vpop.eup %4673 }
 0x644   : > { %v3949_v57 = vpop.f32.mrf.mxu1 }
 0x645   : > { %3157 = vst [vmem:[%s5276_s14 + $0x30] sm:$0xff] %v3141_v8  ;;  %v3109_v3 = vadd.f32 %v5964_v5, %v3086_v27  ;;  %v3950_v39 = vadd.f32 %v3949_v57, %v3948_v35  ;;  %v3133_v35 = vld [vmem:[%s5959_s1 + $0x70] sm:$0xff]  ;;  %v4676_v57 = vpop.eup %4675 }
 0x646   : > { %v3951_v19 = vpop.f32.mrf.mxu1 }
 0x647   : > { %v3142_v62 = vadd.f32 %v3126_v32, %v3109_v3  ;;  %v3087_v41 = vmul.f32 %v4662_v48, %v3950_v39  ;;  %v3134_v48 = vld [vmem:[%s5959_s1 + $0x78] sm:$0xff]  ;;  %s4982_s1 = smov [#allocation16]  }
 0x648   : > { %v3952_v6 = vpop.f32.mrf.mxu1  ;;  %s4839_s28 = sshll.u32 %s4982_s1, 4  ;;  %s4840_s28 = int_to_ptr.vmem [resolvable:$false] %s4839_s28 }
 0x649   : > { %3158 = vst [vmem:[%s5276_s14 + $0x38] sm:$0xff] %v3142_v62  ;;  %v3110_v20 = vadd.f32 %v5964_v5, %v3087_v41  ;;  %v3953_v23 = vadd.f32 %v3952_v6, %v3951_v19  ;;  %s4841_s18 = scalar_lea.vmem %s4840_s28, 4096  ;;  %p4842_p9 = scmp.lt.s32.totalorder %s6021_s20, %s4840_s28 }
 0x64a   : > { %v3954_v25 = vpop.f32.mrf.mxu1  ;;  %p4843_p12 = scmp.lt.s32.totalorder %s4841_s18, %s4835_s19 }
 0x64b   : > { %v3143_v63 = vadd.f32 %v3127_v42, %v3110_v20  ;;  %v3088_v60 = vmul.f32 %v4664_v28, %v3953_v23 }
 0x64c   : > { %v3955_v31 = vpop.f32.mrf.mxu1  ;;  %p4844_p13 = por %p4843_p12, %p4842_p9 }
 0x64d   : > { %3159 = vst [vmem:[%s5276_s14 + $0x40] sm:$0xff] %v3143_v63  ;;  %v3111_v54 = vadd.f32 %v5964_v5, %v3088_v60  ;;  %v3956_v58 = vadd.f32 %v3955_v31, %v3954_v25 }
 0x64e   : > { %v3957_v40 = vpop.f32.mrf.mxu1  ;;  %p4845_p0 = pnand %p4844_p13, %p4838_p2 }
 0x64f   : > { %v3144_v45 = vadd.f32 %v3128_v52, %v3111_v54  ;;  %v3089_v59 = vmul.f32 %v4666_v12, %v3956_v58 }
 0x650   : > { %v3958_v4 = vpop.f32.mrf.mxu1 }
 0x651   : > { %3160 = vst [vmem:[%s5276_s14 + $0x48] sm:$0xff] %v3144_v45  ;;  %v3112_v26 = vadd.f32 %v5964_v5, %v3089_v59  ;;  %v3959_v37 = vadd.f32 %v3958_v4, %v3957_v40 }
 0x652   : > { %v3960_v55 = vpop.f32.mrf.mxu1 }
 0x653   : > { %v3145_v56 = vadd.f32 %v3129_v14, %v3112_v26  ;;  %v3090_v44 = vmul.f32 %v4668_v53, %v3959_v37 }
 0x654   : > { %v3961_v15 = vpop.f32.mrf.mxu1 }
 0x655   : > { %3161 = vst [vmem:[%s5276_s14 + $0x50] sm:$0xff] %v3145_v56  ;;  %v3113_v46 = vadd.f32 %v5964_v5, %v3090_v44  ;;  %v3962_v2 = vadd.f32 %v3961_v15, %v3960_v55 }
 0x656   : > { %v3963_v36 = vpop.f32.mrf.mxu1 }
 0x657   : > { %v3146_v11 = vadd.f32 %v3130_v7, %v3113_v46  ;;  %v3091_v0 = vmul.f32 %v4670_v9, %v3962_v2 }
 0x658   : > { %v3964_v17 = vpop.f32.mrf.mxu1 }
 0x659   : > { %3162 = vst [vmem:[%s5276_s14 + $0x58] sm:$0xff] %v3146_v11  ;;  %v3114_v49 = vadd.f32 %v5964_v5, %v3091_v0  ;;  %v3965_v18 = vadd.f32 %v3964_v17, %v3963_v36 }
 0x65a   : > { %v3966_v10 = vpop.f32.mrf.mxu1 }
 0x65b   : > { %v3147_v24 = vadd.f32 %v3131_v13, %v3114_v49  ;;  %v3092_v47 = vmul.f32 %v4672_v22, %v3965_v18 }
 0x65c   : > { %v3967_v30 = vpop.f32.mrf.mxu1 }
 0x65d   : > { %3163 = vst [vmem:[%s5276_s14 + $0x60] sm:$0xff] %v3147_v24  ;;  %v3115_v29 = vadd.f32 %v5964_v5, %v3092_v47  ;;  %v3968_v51 = vadd.f32 %v3967_v30, %v3966_v10 }
 0x65e   : > { %v3969_v38 = vpop.f32.mrf.mxu1 }
 0x65f   : > { %v3148_v1 = vadd.f32 %v3132_v16, %v3115_v29  ;;  %v3093_v43 = vmul.f32 %v4674_v33, %v3968_v51 }
 0x660   : > { %v3970_v8 = vpop.f32.mrf.mxu1 }
 0x661   : > { %3164 = vst [vmem:[%s5276_s14 + $0x68] sm:$0xff] %v3148_v1  ;;  %v3116_v27 = vadd.f32 %v5964_v5, %v3093_v43  ;;  %v3971_v32 = vadd.f32 %v3970_v8, %v3969_v38 }
 0x663   : > { %v3149_v3 = vadd.f32 %v3133_v35, %v3116_v27  ;;  %v3094_v39 = vmul.f32 %v4676_v57, %v3971_v32 }
 0x665   : > { %3165 = vst [vmem:[%s5276_s14 + $0x70] sm:$0xff] %v3149_v3  ;;  %v3117_v21 = vadd.f32 %v5964_v5, %v3094_v39 }
 0x667   : > { %v3150_v19 = vadd.f32 %v3134_v48, %v3117_v21 }
 0x669   : > { %3166 = vst [vmem:[%s5276_s14 + $0x78] sm:$0xff] %v3150_v19 }
 0x66a   : > { %4848 = shalt.err (!%p4845_p0)
}
 0x66b   : > { %s4849_s30 = scalar_lea.hbm %s6019_s9, 2048  ;;  %s4853_s24 = scalar_lea.hbm %s6143_s15, 8192 }
 0x66c   : > { %p4850_p5 = scmp.ne.s32.totalorder %s6019_s9, %s4849_s30  ;;  %p4854_p8 = scmp.lt.s32.totalorder %s6019_s9, %s6143_s15 }
 0x66d   : > { %p4855_p4 = scmp.lt.s32.totalorder %s4853_s24, %s4849_s30 }
 0x66e   : > { %p4851_p10 = pnand %p4850_p5, %p5219_p7 }
 0x66f   : > { %p4856_p1 = por %p4855_p4, %p4854_p8 }
 0x670   : > { %p4852_p3 = pneg %p4851_p10 }
 0x672   : > { %p4857_p11 = pnand %p4856_p1, %p4852_p3 }
 0x674   : > { %4860 = shalt.err (!%p4857_p11)
}
 0x675   : > { %s4983_s4 = smov 128   ;;  %s4984_s27 = smov 8  }
 0x676   : > { %4256 = dma.vmem_to_hbm [thread:$0]  (%p5219_p7), %s6021_s20, 2048, %s6019_s9, %s6026_s16, %s4983_s4, %s4983_s4, %s4984_s27  }
 0x677 PF: > { %p4293_p2 = scmp.ge.s32.totalorder %s4967_s13, 2  ;;  %s3198_s3 = sand.u32 1, %s4927_s21  }
 0x678   : > { %s3199_s17 = scalar_lea.sflag [#allocation7], %s3198_s3 }
 0x679   : > { %p4279_p9 = pnand %p4293_p2, %p5232_p6 }
 0x67b   : > { %p4280_p12 = pneg %p4279_p9 }
 0x67d   : > { %4922 = dma.done.wait (%p4280_p12), %s3199_s17, 2048  }
 0x67e   : > { %4924 = vsyncadd (%p4280_p12), %s3199_s17, 4294965248  ;;  %s31_s13 = sadd.s32 1, %s4967_s13   ;;  %s6144_s28 = sld [smem:[#allocation23_spill]] }
 0x67f   : > { %p28_p13 = scmp.ge.s32.totalorder %s31_s13, 6   ;;  %s6145_s12 = sld [smem:[#allocation24_spill]] }
 0x680   : > { %s6146_s30 = sld [smem:[#allocation25_spill]]  ;;  %s6147_s21 = smov %s4931_s22 }
 0x681   : > { %s6148_s22 = smov %s4935_s23  ;;  %s6149_s23 = smov %s5227_s5 }
 0x682   : > { %s6150_s24 = smov %s4943_s25  ;;  %s6151_s25 = smov %s4947_s26 }
 0x683   : > { %s6152_s26 = smov %s5224_s7  ;;  %s6153_s27 = smov %s4959_s29 }
 0x684   :  { %30 = sbr.rel (!%p28_p13) target bundleno = 24 (0x18), region = 139 }
 0x685   : > { %s6154_s29 = smov %s6145_s12 }
 0x689   :  { %3204 = vsyncpa [#allocation6], 1 }
 0x68a   :  { %3206 = vsyncpa [#allocation6 + $0x1], 1 }
 0x68b   :  { %3207 = vsyncpa [#allocation9], 1 }
 0x68c   :  { %3208 = vsyncpa [#allocation12], 1 }
 0x68d   :  { %3209 = vsyncpa [#allocation15], 1 }
 0x68e   :  { %3210 = vsyncpa [#allocation7], 1 }
 0x68f   :  { %3212 = vsyncpa [#allocation7 + $0x1], 1 }

</bundles_post_ra>
